<compile_context>
chip_gen: v6e
topology: v6e:2x2x1
jax: 0.10.0
libtpu: 0.0.40
codegen_flags: <defaults>
</compile_context>

<pallas_src>
import jax
import jax.numpy as jnp
from jax import lax
from jax.experimental import pallas as pl
from jax.experimental.pallas import tpu as pltpu

IN_FEATURES = 768 * 2   # 1536
OUT_FEATURES = 768


def _fc_kernel(x_ref, w_ref, b_ref, o_ref):
    # Dropout(p=0.1) in eval mode is the identity, so the fused op is just the
    # affine transform.
    # TODO(synk): training-mode dropout (pltpu.prng_*-based masking) not
    #             emitted; eval-mode semantics (identity) are reproduced here.
    x = x_ref[...].astype(w_ref.dtype)            # stream x through the MXU in W's dtype
    acc = lax.dot_general(                        # (B, K) . (tile_n, K) -> (B, tile_n)
        x, w_ref[...],
        dimension_numbers=(((1,), (1,)), ((), ())),
        preferred_element_type=jnp.float32)
    o_ref[...] = (acc + b_ref[...]).astype(o_ref.dtype)


def _default_tile_n(n):
    """Full N on single-TC chips (v5e/v6e); one tile per TensorCore on v7x."""
    try:
        kind = jax.devices()[0].device_kind.lower()
    except Exception:
        kind = ""
    if "v7" in kind and n % 256 == 0:
        return n // 2            # grid=(2,), one parallel step per TensorCore
    return n                     # grid=(1,), single block, no per-step overhead


def feature_extractor_fc(embeddings, weight_nk, bias, *, tile_n=None):
    """Dropout(eval)=identity followed by Linear(1536, 768).

    embeddings : (B, 1536) float32
    weight_nk  : (768, 1536)  PyTorch nn.Linear layout (out, in); bf16 or f32.
                 NOT transposed here -- keep/cast it once at init.
    bias       : (768,) float32
    returns    : (B, 768) float32
    """
    B, K = embeddings.shape
    N, K2 = weight_nk.shape
    assert K == K2 == IN_FEATURES and N == OUT_FEATURES
    if tile_n is None:
        tile_n = _default_tile_n(N)
    assert N % tile_n == 0 and tile_n % 128 == 0

    b2 = bias.reshape(1, N).astype(jnp.float32)    # 2-D so bias blocks are lane-aligned

    grid = (N // tile_n,)
    return pl.pallas_call(
        _fc_kernel,
        out_shape=jax.ShapeDtypeStruct((B, N), embeddings.dtype),
        grid=grid,
        in_specs=[
            pl.BlockSpec((B, K), lambda j: (0, 0)),        # x: same block every step
            pl.BlockSpec((tile_n, K), lambda j: (j, 0)),   # W (N,K): tile over N rows
            pl.BlockSpec((1, tile_n), lambda j: (0, j)),   # bias: tile over N
        ],
        out_specs=pl.BlockSpec((B, tile_n), lambda j: (0, j)),
        compiler_params=pltpu.CompilerParams(
            dimension_semantics=("parallel",),             # shards grid across TCs on v7x
        ),
    )(embeddings, weight_nk, b2)


if __name__ == "__main__":
    key = jax.random.PRNGKey(0)
    k_emb, k_w, k_b = jax.random.split(key, 3)

    batch = 8  # small batch of sentence pairs; B is a single block, so much
               # larger batches amortize the weight stream with no code change.

    # Stand-in for SentenceTransformer('all-distilroberta-v1').encode(...):
    # deterministic synthetic (B, 1536) embeddings.
    embeddings = jax.random.normal(k_emb, (batch, IN_FEATURES), dtype=jnp.float32)

    # Deterministic Linear(1536, 768) parameters (PyTorch-style uniform bound).
    bound = 1.0 / (IN_FEATURES ** 0.5)
    weight_f32 = jax.random.uniform(k_w, (OUT_FEATURES, IN_FEATURES),
                                    minval=-bound, maxval=bound, dtype=jnp.float32)
    bias = jax.random.uniform(k_b, (OUT_FEATURES,),
                              minval=-bound, maxval=bound, dtype=jnp.float32)

    # Cast the weight to bf16 ONCE at init (outside the hot path): halves the
    # dominant HBM weight read of this bandwidth-bound kernel.
    weight_bf16 = weight_f32.astype(jnp.bfloat16)

    out = feature_extractor_fc(embeddings, weight_bf16, bias)
    out = jax.block_until_ready(out)
    assert out.shape == (batch, OUT_FEATURES)

    # Reference with identical arithmetic (bf16 operands, f32 accumulation).
    ref_bf16 = jnp.dot(embeddings.astype(jnp.bfloat16), weight_bf16.T,
                       preferred_element_type=jnp.float32) + bias
    assert jnp.allclose(out, ref_bf16, atol=2e-3, rtol=2e-3)

    # Full-f32 reference (original module semantics, dropout eval = identity);
    # bf16 weight streaming costs only ~1e-3-level absolute error at this scale.
    ref_f32 = embeddings @ weight_f32.T + bias
    assert jnp.allclose(out, ref_f32, atol=3e-2, rtol=3e-2)

    print("KERNEL_OK")
</pallas_src>

<mosaic_0001>
module attributes {stable_mosaic.version = 11 : i64} {
  func.func @_fc_kernel(%arg0: i32, %arg1: memref<8x1536xf32, #tpu.memory_space<vmem>>, %arg2: memref<768x1536xbf16, #tpu.memory_space<vmem>>, %arg3: memref<1x768xf32, #tpu.memory_space<vmem>>, %arg4: memref<8x768xf32, #tpu.memory_space<vmem>>) attributes {dimension_semantics = [#tpu.dimension_semantics<parallel>], iteration_bounds = array<i64: 1>, scalar_prefetch = 0 : i64, scratch_operands = 0 : i64, tpu.core_type = #tpu.core_type<tc>, window_params = [{pipeline_mode = #tpu.pipeline_mode<synchronous>, transform_indices = @transform_0, window_bounds = array<i64: 8, 1536>}, {transform_indices = @transform_1, window_bounds = array<i64: 768, 1536>}, {transform_indices = @transform_2, window_bounds = array<i64: 1, 768>}, {transform_indices = @transform_3, window_bounds = array<i64: 8, 768>}]} {
    %c0 = arith.constant 0 : index
    %c0_0 = arith.constant 0 : index
    %0 = vector.load %arg1[%c0, %c0_0] : memref<8x1536xf32, #tpu.memory_space<vmem>>, vector<8x1536xf32>
    %1 = arith.truncf %0 : vector<8x1536xf32> to vector<8x1536xbf16>
    %c0_1 = arith.constant 0 : index
    %c0_2 = arith.constant 0 : index
    %2 = vector.load %arg2[%c0_1, %c0_2] : memref<768x1536xbf16, #tpu.memory_space<vmem>>, vector<768x1536xbf16>
    %cst = arith.constant dense<0.000000e+00> : vector<8x768xf32>
    %3 = tpu.matmul %1, %2, %cst {dimension_numbers = #tpu.dot_dimension_numbers<[1], [1], [0], [0], [0, 0, 1, 0], [], []>} : vector<8x1536xbf16>, vector<768x1536xbf16>, vector<8x768xf32> -> vector<8x768xf32>
    %c0_3 = arith.constant 0 : index
    %c0_4 = arith.constant 0 : index
    %4 = vector.load %arg3[%c0_3, %c0_4] : memref<1x768xf32, #tpu.memory_space<vmem>>, vector<1x768xf32>
    %5 = vector.broadcast %4 : vector<1x768xf32> to vector<8x768xf32>
    %6 = arith.addf %3, %5 : vector<8x768xf32>
    %c0_5 = arith.constant 0 : index
    %c0_6 = arith.constant 0 : index
    %7 = vector.load %arg4[%c0_5, %c0_6] : memref<8x768xf32, #tpu.memory_space<vmem>>, vector<8x768xf32>
    tpu.vector_store %arg4[%c0_5, %c0_6], %6 {strides = array<i32>} : memref<8x768xf32, #tpu.memory_space<vmem>>, vector<8x768xf32>,
    return
  }
  func.func @transform_0(%arg0: i32) -> (i32, i32) {
    %c0_i32 = arith.constant 0 : i32
    %c0_i32_0 = arith.constant 0 : i32
    %c0_i32_1 = arith.constant 0 : i32
    return %c0_i32, %c0_i32_0 : i32, i32
  }
  func.func @transform_1(%arg0: i32) -> (i32, i32) {
    %c0_i32 = arith.constant 0 : i32
    %c0_i32_0 = arith.constant 0 : i32
    return %arg0, %c0_i32 : i32, i32
  }
  func.func @transform_2(%arg0: i32) -> (i32, i32) {
    %c0_i32 = arith.constant 0 : i32
    %c0_i32_0 = arith.constant 0 : i32
    return %c0_i32, %arg0 : i32, i32
  }
  func.func @transform_3(%arg0: i32) -> (i32, i32) {
    %c0_i32 = arith.constant 0 : i32
    %c0_i32_0 = arith.constant 0 : i32
    return %c0_i32, %arg0 : i32, i32
  }
}

</mosaic_0001>

<bundles_post_ra>
// kernel: tpu_custom_call.1
= control target key start
LH: loop header
LB: loop body
LE: loop exit
PB: predicated region body
PF: predicated region fallthrough
CT: control target
= control target key end

     0   :  { %8 = vsyncpa [#allocation3], 0  ;;  %s5999_s0 = inlined_call_operand.hbm [shape: f32[8,1536], index: 0, kind: input, shape index: {}]   ;;  %s6000_s1 = inlined_call_operand.hbm [shape: bf16[768,1536], index: 1, kind: input, shape index: {}]   ;;  %s6001_s2 = inlined_call_operand.hbm [shape: f32[1,768], index: 2, kind: input, shape index: {}]   ;;  %s6002_s3 = inlined_call_operand.hbm [shape: f32[8,768], index: 3, kind: output, shape index: {}]  }
   0x1   :  { %9 = vsyncpa [#allocation6], 0 }
   0x2   :  { %10 = vsyncpa [#allocation4], 0  ;;  %s5857_s12 = smov [#allocation5]  }
   0x3   :  { %s26_s13 = sshll.u32 %s5857_s12, 4  ;;  %s27_s13 = int_to_ptr.vmem [resolvable:$true] %s26_s13 }
   0x4   :  { %s5779_s14 = scalar_lea.vmem %s27_s13, 73728  ;;  %p5784_p1 = scmp.lt.s32.totalorder %s27_s13, %s27_s13 }
   0x5   :  { %p5780_p0 = scmp.ne.s32.totalorder %s27_s13, %s5779_s14  ;;  %p5785_p2 = scmp.lt.s32.totalorder %s5779_s14, %s5779_s14 }
   0x7   :  { %p5786_p3 = por %p5785_p2, %p5784_p1 }
   0x9   :  { %p5787_p4 = pnand %p5786_p3, %p5780_p0 }
   0xb   :  { %5790 = shalt.err (!%p5787_p4)
}
   0xc   :  { %s5858_s15 = smov 768   ;;  %s5859_s16 = smov 48  }
   0xd   :  { %32 = dma.hbm_to_vmem [thread:$0]  %s6000_s1, 73728, %s27_s13, [#allocation6], %s5858_s15, %s5858_s15, %s5859_s16  }
   0xe   :  { %s5860_s19 = smov [#allocation2]   ;;  %s5861_s21 = smov [#allocation7]  }
   0xf   :  { %s17_s20 = sshll.u32 %s5860_s19, 4  ;;  %s39_s22 = sshll.u32 %s5861_s21, 4  ;;  %s18_s20 = int_to_ptr.vmem [resolvable:$true] %s17_s20  ;;  %s40_s22 = int_to_ptr.vmem [resolvable:$true] %s39_s22 }
  0x10   :  { %s5799_s23 = scalar_lea.vmem %s18_s20, 1536  ;;  %p5804_p6 = scmp.lt.s32.totalorder %s18_s20, %s18_s20 }
  0x11   :  { %p5800_p5 = scmp.ne.s32.totalorder %s18_s20, %s5799_s23  ;;  %p5805_p7 = scmp.lt.s32.totalorder %s5799_s23, %s5799_s23 }
  0x13   :  { %p5806_p8 = por %p5805_p7, %p5804_p6 }
  0x15   :  { %p5807_p9 = pnand %p5806_p8, %p5800_p5 }
  0x17   :  { %5810 = shalt.err (!%p5807_p9)
}
  0x18   :  { %20 = dma.hbm_to_vmem [thread:$0]  %s5999_s0, 1536, %s18_s20, [#allocation3]  }
  0x19   :  { %s5819_s26 = scalar_lea.vmem %s40_s22, 96  ;;  %p5824_p11 = scmp.lt.s32.totalorder %s40_s22, %s40_s22 }
  0x1a   :  { %p5820_p10 = scmp.ne.s32.totalorder %s40_s22, %s5819_s26  ;;  %p5825_p12 = scmp.lt.s32.totalorder %s5819_s26, %s5819_s26 }
  0x1c   :  { %p5826_p13 = por %p5825_p12, %p5824_p11 }
  0x1e   :  { %p5827_p0 = pnand %p5826_p13, %p5820_p10 }
  0x20   :  { %5830 = shalt.err (!%p5827_p0)
}
  0x21   :  { %42 = dma.hbm_to_vmem [thread:$0]  %s6001_s2, 96, %s40_s22, [#allocation6]  }
  0x22   :  { %5851 = dma.done.wait [#allocation3], 1536  }
  0x23   :  { %5852 = vsyncadd [#allocation3], 4294965760 }
  0x24   :  { %5853 = dma.done.wait [#allocation6], 73824  }
  0x25   :  { %5854 = vsyncadd [#allocation6], 4294893472  ;;  %v4906_v0 = vld [vmem:[#allocation5 + $0x2a4] ss:$48 sps:$4 sm:$0xff]   ;;  %v4908_v1 = vld [vmem:[#allocation5 + $0x2ac] ss:$48 sps:$4 sm:$0xff]  }
  0x26   :  { %3564 = vmatprep.subr.bf16.mxu0 %v4906_v0  ;;  %v4910_v2 = vld [vmem:[#allocation5 + $0x2a0] ss:$48 sps:$4 sm:$0xff]   ;;  %v4911_v3 = vld [vmem:[#allocation5 + $0x2a8] ss:$48 sps:$4 sm:$0xff]   ;;  %3605 = vmatprep.subr.bf16.mxu1 %v4908_v1  ;;  %v4912_v4 = vld [vmem:[#allocation5 + $0x244] ss:$48 sps:$4 sm:$0xff]  }
  0x27   :  { %3565 = vmatpush1.bf16.xpose.msra.mxu0 %v4910_v2  ;;  %3606 = vmatpush1.bf16.xpose.msra.mxu1 %v4911_v3  ;;  %v4914_v5 = vld [vmem:[#allocation5 + $0x24c] ss:$48 sps:$4 sm:$0xff]   ;;  %v4916_v6 = vld [vmem:[#allocation5 + $0x240] ss:$48 sps:$4 sm:$0xff]   ;;  %v4917_v7 = vld [vmem:[#allocation5 + $0x248] ss:$48 sps:$4 sm:$0xff]  }
  0x28   :  { %3566 = vmatprep.subr.bf16.mxu0 %v4912_v4  ;;  %3607 = vmatprep.subr.bf16.mxu1 %v4914_v5  ;;  %v4918_v8 = vld [vmem:[#allocation5 + $0x1e4] ss:$48 sps:$4 sm:$0xff]   ;;  %v4920_v9 = vld [vmem:[#allocation5 + $0x1ec] ss:$48 sps:$4 sm:$0xff]   ;;  %v4922_v10 = vld [vmem:[#allocation5 + $0x1e0] ss:$48 sps:$4 sm:$0xff]  }
  0x29   :  { %v4923_v11 = vld [vmem:[#allocation5 + $0x1e8] ss:$48 sps:$4 sm:$0xff]   ;;  %v4924_v12 = vld [vmem:[#allocation5 + $0x184] ss:$48 sps:$4 sm:$0xff]   ;;  %v4926_v13 = vld [vmem:[#allocation5 + $0x18c] ss:$48 sps:$4 sm:$0xff]  }
  0x2a   :  { %v4928_v14 = vld [vmem:[#allocation5 + $0x180] ss:$48 sps:$4 sm:$0xff]   ;;  %v4929_v15 = vld [vmem:[#allocation5 + $0x188] ss:$48 sps:$4 sm:$0xff]   ;;  %v4930_v16 = vld [vmem:[#allocation5 + $0x124] ss:$48 sps:$4 sm:$0xff]  }
  0x2b   :  { %v4932_v17 = vld [vmem:[#allocation5 + $0x12c] ss:$48 sps:$4 sm:$0xff]   ;;  %v4934_v18 = vld [vmem:[#allocation5 + $0x120] ss:$48 sps:$4 sm:$0xff]   ;;  %v4935_v19 = vld [vmem:[#allocation5 + $0x128] ss:$48 sps:$4 sm:$0xff]  }
  0x2c   :  { %v4936_v20 = vld [vmem:[#allocation5 + $0xc4] ss:$48 sps:$4 sm:$0xff]   ;;  %v4938_v21 = vld [vmem:[#allocation5 + $0xcc] ss:$48 sps:$4 sm:$0xff]   ;;  %v4940_v22 = vld [vmem:[#allocation5 + $0xc0] ss:$48 sps:$4 sm:$0xff]  }
  0x2d   :  { %v4941_v23 = vld [vmem:[#allocation5 + $0xc8] ss:$48 sps:$4 sm:$0xff]   ;;  %v4942_v24 = vld [vmem:[#allocation5 + $0x64] ss:$48 sps:$4 sm:$0xff]   ;;  %v4944_v25 = vld [vmem:[#allocation5 + $0x6c] ss:$48 sps:$4 sm:$0xff]  }
  0x2e   :  { %v53_v26 = vld [vmem:[#allocation2 + $0x8] sm:$0xff]  ;;  %v55_v28 = vld [vmem:[#allocation2 + $0x18] sm:$0xff]  ;;  %v4946_v30 = vld [vmem:[#allocation5 + $0x60] ss:$48 sps:$4 sm:$0xff]   ;;  %s5862_s0 = smov [#allocation8]  }
  0x2f   :  { %3567 = vmatpush1.bf16.xpose.msra.mxu0 %v4916_v6  ;;  %3608 = vmatpush1.bf16.xpose.msra.mxu1 %v4917_v7  ;;  %v5892_v27 = vpack.c.bf16 %v53_v26, %v53_v26  ;;  %v5894_v29 = vpack.c.bf16 %v55_v28, %v55_v28  ;;  %v4947_v31 = vld [vmem:[#allocation5 + $0x68] ss:$48 sps:$4 sm:$0xff]   ;;  %v4948_v32 = vld [vmem:[#allocation5 + $0x4] ss:$48 sps:$4 sm:$0xff]   ;;  %v4950_v33 = vld [vmem:[#allocation5 + $0xc] ss:$48 sps:$4 sm:$0xff]  }
  0x30   :  { %3568 = vmatprep.subr.bf16.mxu0 %v4918_v8  ;;  %3609 = vmatprep.subr.bf16.mxu1 %v4920_v9  ;;  %v4952_v34 = vld [vmem:[#allocation5] ss:$48 sps:$4 sm:$0xff]   ;;  %v4953_v35 = vld [vmem:[#allocation5 + $0x8] ss:$48 sps:$4 sm:$0xff]   ;;  %v4954_v36 = vld [vmem:[#allocation5 + $0x5a4] ss:$48 sps:$4 sm:$0xff]  }
  0x31   :  { %3596 = vmatprep.mubr.bf16.mxu0 %v5892_v27  ;;  %3637 = vmatprep.mubr.bf16.mxu1 %v5894_v29  ;;  %v4956_v37 = vld [vmem:[#allocation5 + $0x5ac] ss:$48 sps:$4 sm:$0xff]   ;;  %v4958_v38 = vld [vmem:[#allocation5 + $0x5a0] ss:$48 sps:$4 sm:$0xff]   ;;  %v4959_v39 = vld [vmem:[#allocation5 + $0x5a8] ss:$48 sps:$4 sm:$0xff]  }
  0x32   :  { %v4960_v40 = vld [vmem:[#allocation5 + $0x544] ss:$48 sps:$4 sm:$0xff]   ;;  %v4962_v41 = vld [vmem:[#allocation5 + $0x54c] ss:$48 sps:$4 sm:$0xff]   ;;  %v4964_v42 = vld [vmem:[#allocation5 + $0x540] ss:$48 sps:$4 sm:$0xff]  }
  0x33   :  { %v4965_v43 = vld [vmem:[#allocation5 + $0x548] ss:$48 sps:$4 sm:$0xff]   ;;  %v4966_v44 = vld [vmem:[#allocation5 + $0x4e4] ss:$48 sps:$4 sm:$0xff]   ;;  %v4968_v45 = vld [vmem:[#allocation5 + $0x4ec] ss:$48 sps:$4 sm:$0xff]  }
  0x34   :  { %v4970_v46 = vld [vmem:[#allocation5 + $0x4e0] ss:$48 sps:$4 sm:$0xff]   ;;  %v4971_v47 = vld [vmem:[#allocation5 + $0x4e8] ss:$48 sps:$4 sm:$0xff]   ;;  %v4972_v48 = vld [vmem:[#allocation5 + $0x484] ss:$48 sps:$4 sm:$0xff]  }
  0x35   :  { %v4974_v49 = vld [vmem:[#allocation5 + $0x48c] ss:$48 sps:$4 sm:$0xff]   ;;  %v4976_v50 = vld [vmem:[#allocation5 + $0x480] ss:$48 sps:$4 sm:$0xff]   ;;  %v4977_v51 = vld [vmem:[#allocation5 + $0x488] ss:$48 sps:$4 sm:$0xff]  }
  0x36   :  { %v4978_v52 = vld [vmem:[#allocation5 + $0x424] ss:$48 sps:$4 sm:$0xff]   ;;  %v4980_v53 = vld [vmem:[#allocation5 + $0x42c] ss:$48 sps:$4 sm:$0xff]   ;;  %v4982_v54 = vld [vmem:[#allocation5 + $0x420] ss:$48 sps:$4 sm:$0xff]  }
  0x37   :  { %3569 = vmatpush1.bf16.xpose.msra.mxu0 %v4922_v10  ;;  %3610 = vmatpush1.bf16.xpose.msra.mxu1 %v4923_v11  ;;  %v4983_v55 = vld [vmem:[#allocation5 + $0x428] ss:$48 sps:$4 sm:$0xff]   ;;  %v4984_v56 = vld [vmem:[#allocation5 + $0x3c4] ss:$48 sps:$4 sm:$0xff]   ;;  %v4986_v57 = vld [vmem:[#allocation5 + $0x3cc] ss:$48 sps:$4 sm:$0xff]  }
  0x38   :  { %3570 = vmatprep.subr.bf16.mxu0 %v4924_v12  ;;  %3611 = vmatprep.subr.bf16.mxu1 %v4926_v13  ;;  %v4988_v58 = vld [vmem:[#allocation5 + $0x3c0] ss:$48 sps:$4 sm:$0xff]   ;;  %v4989_v59 = vld [vmem:[#allocation5 + $0x3c8] ss:$48 sps:$4 sm:$0xff]   ;;  %v4990_v60 = vld [vmem:[#allocation5 + $0x364] ss:$48 sps:$4 sm:$0xff]  }
  0x39   :  { %v4992_v61 = vld [vmem:[#allocation5 + $0x36c] ss:$48 sps:$4 sm:$0xff]   ;;  %v4994_v62 = vld [vmem:[#allocation5 + $0x360] ss:$48 sps:$4 sm:$0xff]   ;;  %v4995_v63 = vld [vmem:[#allocation5 + $0x368] ss:$48 sps:$4 sm:$0xff]  }
  0x3a   :  { %v4996_v0 = vld [vmem:[#allocation5 + $0x304] ss:$48 sps:$4 sm:$0xff]   ;;  %v4998_v1 = vld [vmem:[#allocation5 + $0x30c] ss:$48 sps:$4 sm:$0xff]   ;;  %v5000_v2 = vld [vmem:[#allocation5 + $0x300] ss:$48 sps:$4 sm:$0xff]  }
  0x3b   :  { %v5001_v3 = vld [vmem:[#allocation5 + $0x308] ss:$48 sps:$4 sm:$0xff]   ;;  %v5004_v4 = vld [vmem:[#allocation5 + $0x2b4] ss:$48 sps:$4 sm:$0xff]   ;;  %v5007_v5 = vld [vmem:[#allocation5 + $0x2bc] ss:$48 sps:$4 sm:$0xff]  }
  0x3c   :  { %v52_v6 = vld [vmem:[#allocation2] sm:$0xff]  ;;  %v54_v7 = vld [vmem:[#allocation2 + $0x10] sm:$0xff]  ;;  %v57_v8 = vld [vmem:[#allocation2 + $0x28] sm:$0xff]  ;;  %s4314_s2 = sshll.u32 %s5862_s0, 4  ;;  %s4315_s2 = int_to_ptr.vmem [resolvable:$true] %s4314_s2 }
  0x3d   :  { %v59_v9 = vld [vmem:[#allocation2 + $0x38] sm:$0xff]  ;;  %v5002_v10 = vld [vmem:[#allocation5 + $0x2b0] ss:$48 sps:$4 sm:$0xff]   ;;  %v5898_v11 = vpack.c.bf16 %v52_v6, %v52_v6  ;;  %v5900_v12 = vpack.c.bf16 %v54_v7, %v54_v7  ;;  %v5088_v6 = vld [vmem:[#allocation5 + $0x374] ss:$48 sps:$4 sm:$0xff]   ;;  %s5831_s28 = scalar_lea.vmem %s4315_s2, 768  ;;  %p5836_p2 = scmp.lt.s32.totalorder %s4315_s2, %s4315_s2 }
  0x3e   :  { %v5005_v13 = vld [vmem:[#allocation5 + $0x2b8] ss:$48 sps:$4 sm:$0xff]   ;;  %v5020_v26 = vld [vmem:[#allocation5 + $0x190] ss:$48 sps:$4 sm:$0xff]   ;;  %v5091_v7 = vld [vmem:[#allocation5 + $0x37c] ss:$48 sps:$4 sm:$0xff]   ;;  %p5832_p1 = scmp.ne.s32.totalorder %s4315_s2, %s5831_s28  ;;  %p5837_p3 = scmp.lt.s32.totalorder %s5831_s28, %s5831_s28 }
  0x3f   :  { %3571 = vmatpush1.bf16.xpose.msra.mxu0 %v4928_v14  ;;  %3612 = vmatpush1.bf16.xpose.msra.mxu1 %v4929_v15  ;;  %v5010_v14 = vld [vmem:[#allocation5 + $0x254] ss:$48 sps:$4 sm:$0xff]   ;;  %v5013_v15 = vld [vmem:[#allocation5 + $0x25c] ss:$48 sps:$4 sm:$0xff]   ;;  %v5023_v28 = vld [vmem:[#allocation5 + $0x198] ss:$48 sps:$4 sm:$0xff]  }
  0x40   :  { %3572 = vmatprep.subr.bf16.mxu0 %v4930_v16  ;;  %3613 = vmatprep.subr.bf16.mxu1 %v4932_v17  ;;  %v5902_v16 = vpack.c.bf16 %v57_v8, %v57_v8  ;;  %v5904_v17 = vpack.c.bf16 %v59_v9, %v59_v9  ;;  %v5086_v8 = vld [vmem:[#allocation5 + $0x370] ss:$48 sps:$4 sm:$0xff]   ;;  %v5089_v9 = vld [vmem:[#allocation5 + $0x378] ss:$48 sps:$4 sm:$0xff]   ;;  %p5838_p4 = por %p5837_p3, %p5836_p2 }
  0x42   :  { %p5839_p5 = pnand %p5838_p4, %p5832_p1 }
  0x47   :  { %3573 = vmatpush1.bf16.xpose.msra.mxu0 %v4934_v18  ;;  %3614 = vmatpush1.bf16.xpose.msra.mxu1 %v4935_v19  ;;  %v5008_v18 = vld [vmem:[#allocation5 + $0x250] ss:$48 sps:$4 sm:$0xff]   ;;  %v5011_v19 = vld [vmem:[#allocation5 + $0x258] ss:$48 sps:$4 sm:$0xff]  }
  0x48   :  { %3574 = vmatprep.subr.bf16.mxu0 %v4936_v20  ;;  %3615 = vmatprep.subr.bf16.mxu1 %v4938_v21  ;;  %v5016_v20 = vld [vmem:[#allocation5 + $0x1f4] ss:$48 sps:$4 sm:$0xff]   ;;  %v5019_v21 = vld [vmem:[#allocation5 + $0x1fc] ss:$48 sps:$4 sm:$0xff]  }
  0x4f   :  { %3575 = vmatpush1.bf16.xpose.msra.mxu0 %v4940_v22  ;;  %3616 = vmatpush1.bf16.xpose.msra.mxu1 %v4941_v23  ;;  %v5014_v22 = vld [vmem:[#allocation5 + $0x1f0] ss:$48 sps:$4 sm:$0xff]   ;;  %v5017_v23 = vld [vmem:[#allocation5 + $0x1f8] ss:$48 sps:$4 sm:$0xff]  }
  0x50   :  { %3576 = vmatprep.subr.bf16.mxu0 %v4942_v24  ;;  %3617 = vmatprep.subr.bf16.mxu1 %v4944_v25  ;;  %v5022_v24 = vld [vmem:[#allocation5 + $0x194] ss:$48 sps:$4 sm:$0xff]   ;;  %v5025_v25 = vld [vmem:[#allocation5 + $0x19c] ss:$48 sps:$4 sm:$0xff]  }
  0x57   :  { %3577 = vmatpush1.bf16.xpose.msra.mxu0 %v4946_v30  ;;  %3618 = vmatpush1.bf16.xpose.msra.mxu1 %v4947_v31  ;;  %v5028_v30 = vld [vmem:[#allocation5 + $0x134] ss:$48 sps:$4 sm:$0xff]   ;;  %v5031_v31 = vld [vmem:[#allocation5 + $0x13c] ss:$48 sps:$4 sm:$0xff]  }
  0x58   :  { %3578 = vmatprep.subr.bf16.mxu0 %v4948_v32  ;;  %3619 = vmatprep.subr.bf16.mxu1 %v4950_v33  ;;  %v5026_v32 = vld [vmem:[#allocation5 + $0x130] ss:$48 sps:$4 sm:$0xff]   ;;  %v5029_v33 = vld [vmem:[#allocation5 + $0x138] ss:$48 sps:$4 sm:$0xff]  }
  0x5f   :  { %3579 = vmatpush1.bf16.xpose.msra.mxu0 %v4952_v34  ;;  %3620 = vmatpush1.bf16.xpose.msra.mxu1 %v4953_v35  ;;  %v5034_v34 = vld [vmem:[#allocation5 + $0xd4] ss:$48 sps:$4 sm:$0xff]   ;;  %v5037_v35 = vld [vmem:[#allocation5 + $0xdc] ss:$48 sps:$4 sm:$0xff]  }
  0x60   :  { %3580 = vmatprep.subr.bf16.mxu0 %v4954_v36  ;;  %3621 = vmatprep.subr.bf16.mxu1 %v4956_v37  ;;  %v5032_v36 = vld [vmem:[#allocation5 + $0xd0] ss:$48 sps:$4 sm:$0xff]   ;;  %v5035_v37 = vld [vmem:[#allocation5 + $0xd8] ss:$48 sps:$4 sm:$0xff]  }
  0x67   :  { %3581 = vmatpush2.bf16.xpose.msra.mxu0 %v4958_v38  ;;  %3622 = vmatpush2.bf16.xpose.msra.mxu1 %v4959_v39  ;;  %v5040_v38 = vld [vmem:[#allocation5 + $0x74] ss:$48 sps:$4 sm:$0xff]   ;;  %v5043_v39 = vld [vmem:[#allocation5 + $0x7c] ss:$48 sps:$4 sm:$0xff]  }
  0x68   :  { %3582 = vmatprep.subr.bf16.mxu0 %v4960_v40  ;;  %3623 = vmatprep.subr.bf16.mxu1 %v4962_v41  ;;  %v5038_v40 = vld [vmem:[#allocation5 + $0x70] ss:$48 sps:$4 sm:$0xff]   ;;  %v5041_v41 = vld [vmem:[#allocation5 + $0x78] ss:$48 sps:$4 sm:$0xff]  }
  0x6f   :  { %3583 = vmatpush2.bf16.xpose.msra.mxu0 %v4964_v42  ;;  %3624 = vmatpush2.bf16.xpose.msra.mxu1 %v4965_v43  ;;  %v5046_v42 = vld [vmem:[#allocation5 + $0x14] ss:$48 sps:$4 sm:$0xff]   ;;  %v5049_v43 = vld [vmem:[#allocation5 + $0x1c] ss:$48 sps:$4 sm:$0xff]  }
  0x70   :  { %3584 = vmatprep.subr.bf16.mxu0 %v4966_v44  ;;  %3625 = vmatprep.subr.bf16.mxu1 %v4968_v45  ;;  %v5044_v44 = vld [vmem:[#allocation5 + $0x10] ss:$48 sps:$4 sm:$0xff]   ;;  %v5047_v45 = vld [vmem:[#allocation5 + $0x18] ss:$48 sps:$4 sm:$0xff]  }
  0x77   :  { %3585 = vmatpush2.bf16.xpose.msra.mxu0 %v4970_v46  ;;  %3626 = vmatpush2.bf16.xpose.msra.mxu1 %v4971_v47  ;;  %v5052_v46 = vld [vmem:[#allocation5 + $0x5b4] ss:$48 sps:$4 sm:$0xff]   ;;  %v5055_v47 = vld [vmem:[#allocation5 + $0x5bc] ss:$48 sps:$4 sm:$0xff]  }
  0x78   :  { %3586 = vmatprep.subr.bf16.mxu0 %v4972_v48  ;;  %3627 = vmatprep.subr.bf16.mxu1 %v4974_v49  ;;  %v5050_v48 = vld [vmem:[#allocation5 + $0x5b0] ss:$48 sps:$4 sm:$0xff]   ;;  %v5053_v49 = vld [vmem:[#allocation5 + $0x5b8] ss:$48 sps:$4 sm:$0xff]  }
  0x7f   :  { %3587 = vmatpush2.bf16.xpose.msra.mxu0 %v4976_v50  ;;  %3628 = vmatpush2.bf16.xpose.msra.mxu1 %v4977_v51  ;;  %v5058_v50 = vld [vmem:[#allocation5 + $0x554] ss:$48 sps:$4 sm:$0xff]   ;;  %v5061_v51 = vld [vmem:[#allocation5 + $0x55c] ss:$48 sps:$4 sm:$0xff]  }
  0x80   :  { %3588 = vmatprep.subr.bf16.mxu0 %v4978_v52  ;;  %3629 = vmatprep.subr.bf16.mxu1 %v4980_v53  ;;  %v5056_v52 = vld [vmem:[#allocation5 + $0x550] ss:$48 sps:$4 sm:$0xff]   ;;  %v5059_v53 = vld [vmem:[#allocation5 + $0x558] ss:$48 sps:$4 sm:$0xff]  }
  0x87   :  { %3589 = vmatpush2.bf16.xpose.msra.mxu0 %v4982_v54  ;;  %3630 = vmatpush2.bf16.xpose.msra.mxu1 %v4983_v55  ;;  %v5064_v54 = vld [vmem:[#allocation5 + $0x4f4] ss:$48 sps:$4 sm:$0xff]   ;;  %v5067_v55 = vld [vmem:[#allocation5 + $0x4fc] ss:$48 sps:$4 sm:$0xff]  }
  0x88   :  { %3590 = vmatprep.subr.bf16.mxu0 %v4984_v56  ;;  %3631 = vmatprep.subr.bf16.mxu1 %v4986_v57  ;;  %v5062_v56 = vld [vmem:[#allocation5 + $0x4f0] ss:$48 sps:$4 sm:$0xff]   ;;  %v5065_v57 = vld [vmem:[#allocation5 + $0x4f8] ss:$48 sps:$4 sm:$0xff]  }
  0x8f   :  { %3591 = vmatpush2.bf16.xpose.msra.mxu0 %v4988_v58  ;;  %3632 = vmatpush2.bf16.xpose.msra.mxu1 %v4989_v59  ;;  %v5070_v58 = vld [vmem:[#allocation5 + $0x494] ss:$48 sps:$4 sm:$0xff]   ;;  %v5073_v59 = vld [vmem:[#allocation5 + $0x49c] ss:$48 sps:$4 sm:$0xff]  }
  0x90   :  { %3592 = vmatprep.subr.bf16.mxu0 %v4990_v60  ;;  %3633 = vmatprep.subr.bf16.mxu1 %v4992_v61  ;;  %v5068_v60 = vld [vmem:[#allocation5 + $0x490] ss:$48 sps:$4 sm:$0xff]   ;;  %v5071_v61 = vld [vmem:[#allocation5 + $0x498] ss:$48 sps:$4 sm:$0xff]  }
  0x97   :  { %3593 = vmatpush2.bf16.xpose.msra.mxu0 %v4994_v62  ;;  %3634 = vmatpush2.bf16.xpose.msra.mxu1 %v4995_v63  ;;  %v5076_v62 = vld [vmem:[#allocation5 + $0x434] ss:$48 sps:$4 sm:$0xff]   ;;  %v5079_v63 = vld [vmem:[#allocation5 + $0x43c] ss:$48 sps:$4 sm:$0xff]  }
  0x98   :  { %3594 = vmatprep.subr.bf16.mxu0 %v4996_v0  ;;  %3635 = vmatprep.subr.bf16.mxu1 %v4998_v1  ;;  %v5074_v0 = vld [vmem:[#allocation5 + $0x430] ss:$48 sps:$4 sm:$0xff]   ;;  %v5077_v1 = vld [vmem:[#allocation5 + $0x438] ss:$48 sps:$4 sm:$0xff]  }
  0x9f   :  { %3595 = vmatpush2.bf16.xpose.msra.mxu0 %v5000_v2  ;;  %3636 = vmatpush2.bf16.xpose.msra.mxu1 %v5001_v3  ;;  %v5082_v2 = vld [vmem:[#allocation5 + $0x3d4] ss:$48 sps:$4 sm:$0xff]   ;;  %v5085_v3 = vld [vmem:[#allocation5 + $0x3dc] ss:$48 sps:$4 sm:$0xff]  }
  0xa0   :  { %3646 = vmatprep.subr.bf16.mxu0 %v5004_v4  ;;  %3687 = vmatprep.subr.bf16.mxu1 %v5007_v5  ;;  %v5080_v4 = vld [vmem:[#allocation5 + $0x3d0] ss:$48 sps:$4 sm:$0xff]   ;;  %v5083_v5 = vld [vmem:[#allocation5 + $0x3d8] ss:$48 sps:$4 sm:$0xff]  }
  0xa6   :  { %3597 = vmatmul.mubr.bf16.vlgmr.msra.gmra.mxu0 %v5898_v11  ;;  %3638 = vmatmul.mubr.bf16.vlgmr.msra.gmra.mxu1 %v5900_v12 }
  0xa7   :  { %3647 = vmatpush1.bf16.xpose.msra.mxu0 %v5002_v10  ;;  %3688 = vmatpush1.bf16.xpose.msra.mxu1 %v5005_v13  ;;  %v5094_v10 = vld [vmem:[#allocation5 + $0x314] ss:$48 sps:$4 sm:$0xff]   ;;  %v5097_v13 = vld [vmem:[#allocation5 + $0x31c] ss:$48 sps:$4 sm:$0xff]  }
  0xa8   :  { %3648 = vmatprep.subr.bf16.mxu0 %v5010_v14  ;;  %3689 = vmatprep.subr.bf16.mxu1 %v5013_v15  ;;  %v5092_v14 = vld [vmem:[#allocation5 + $0x310] ss:$48 sps:$4 sm:$0xff]   ;;  %v5095_v15 = vld [vmem:[#allocation5 + $0x318] ss:$48 sps:$4 sm:$0xff]  }
  0xa9   :  { %3678 = vmatprep.mubr.bf16.mxu0 %v5902_v16  ;;  %3719 = vmatprep.mubr.bf16.mxu1 %v5904_v17 }
  0xaf   :  { %3649 = vmatpush1.bf16.xpose.msra.mxu0 %v5008_v18  ;;  %3690 = vmatpush1.bf16.xpose.msra.mxu1 %v5011_v19  ;;  %v5100_v18 = vld [vmem:[#allocation5 + $0x2c4] ss:$48 sps:$4 sm:$0xff]   ;;  %v5103_v19 = vld [vmem:[#allocation5 + $0x2cc] ss:$48 sps:$4 sm:$0xff]  }
  0xb0   :  { %3650 = vmatprep.subr.bf16.mxu0 %v5016_v20  ;;  %3691 = vmatprep.subr.bf16.mxu1 %v5019_v21  ;;  %v56_v20 = vld [vmem:[#allocation2 + $0x20] sm:$0xff]  ;;  %v58_v21 = vld [vmem:[#allocation2 + $0x30] sm:$0xff] }
  0xb7   :  { %3651 = vmatpush1.bf16.xpose.msra.mxu0 %v5014_v22  ;;  %3692 = vmatpush1.bf16.xpose.msra.mxu1 %v5017_v23  ;;  %v61_v22 = vld [vmem:[#allocation2 + $0x48] sm:$0xff]  ;;  %v63_v23 = vld [vmem:[#allocation2 + $0x58] sm:$0xff] }
  0xb8   :  { %3652 = vmatprep.subr.bf16.mxu0 %v5022_v24  ;;  %3693 = vmatprep.subr.bf16.mxu1 %v5025_v25  ;;  %v5098_v24 = vld [vmem:[#allocation5 + $0x2c0] ss:$48 sps:$4 sm:$0xff]   ;;  %v5910_v25 = vpack.c.bf16 %v56_v20, %v56_v20 }
  0xbf   :  { %3653 = vmatpush1.bf16.xpose.msra.mxu0 %v5020_v26  ;;  %3694 = vmatpush1.bf16.xpose.msra.mxu1 %v5023_v28  ;;  %v5912_v26 = vpack.c.bf16 %v58_v21, %v58_v21  ;;  %v5101_v28 = vld [vmem:[#allocation5 + $0x2c8] ss:$48 sps:$4 sm:$0xff]  }
  0xc0   :  { %3654 = vmatprep.subr.bf16.mxu0 %v5028_v30  ;;  %3695 = vmatprep.subr.bf16.mxu1 %v5031_v31  ;;  %v5106_v30 = vld [vmem:[#allocation5 + $0x264] ss:$48 sps:$4 sm:$0xff]   ;;  %v5109_v31 = vld [vmem:[#allocation5 + $0x26c] ss:$48 sps:$4 sm:$0xff]  }
  0xc7   :  { %3655 = vmatpush1.bf16.xpose.msra.mxu0 %v5026_v32  ;;  %3696 = vmatpush1.bf16.xpose.msra.mxu1 %v5029_v33  ;;  %v5914_v32 = vpack.c.bf16 %v61_v22, %v61_v22  ;;  %v5916_v33 = vpack.c.bf16 %v63_v23, %v63_v23  ;;  %v5152_v23 = vld [vmem:[#allocation5 + $0x560] ss:$48 sps:$4 sm:$0xff]  }
  0xc8   :  { %3656 = vmatprep.subr.bf16.mxu0 %v5034_v34  ;;  %3697 = vmatprep.subr.bf16.mxu1 %v5037_v35  ;;  %v5104_v34 = vld [vmem:[#allocation5 + $0x260] ss:$48 sps:$4 sm:$0xff]   ;;  %v5107_v35 = vld [vmem:[#allocation5 + $0x268] ss:$48 sps:$4 sm:$0xff]  }
  0xcf   :  { %3657 = vmatpush1.bf16.xpose.msra.mxu0 %v5032_v36  ;;  %3698 = vmatpush1.bf16.xpose.msra.mxu1 %v5035_v37  ;;  %v5112_v36 = vld [vmem:[#allocation5 + $0x204] ss:$48 sps:$4 sm:$0xff]   ;;  %v5115_v37 = vld [vmem:[#allocation5 + $0x20c] ss:$48 sps:$4 sm:$0xff]  }
  0xd0   :  { %3658 = vmatprep.subr.bf16.mxu0 %v5040_v38  ;;  %3699 = vmatprep.subr.bf16.mxu1 %v5043_v39  ;;  %v5110_v38 = vld [vmem:[#allocation5 + $0x200] ss:$48 sps:$4 sm:$0xff]   ;;  %v5113_v39 = vld [vmem:[#allocation5 + $0x208] ss:$48 sps:$4 sm:$0xff]  }
  0xd7   :  { %3659 = vmatpush1.bf16.xpose.msra.mxu0 %v5038_v40  ;;  %3700 = vmatpush1.bf16.xpose.msra.mxu1 %v5041_v41  ;;  %v5118_v40 = vld [vmem:[#allocation5 + $0x1a4] ss:$48 sps:$4 sm:$0xff]   ;;  %v5121_v41 = vld [vmem:[#allocation5 + $0x1ac] ss:$48 sps:$4 sm:$0xff]  }
  0xd8   :  { %3660 = vmatprep.subr.bf16.mxu0 %v5046_v42  ;;  %3701 = vmatprep.subr.bf16.mxu1 %v5049_v43  ;;  %v5116_v42 = vld [vmem:[#allocation5 + $0x1a0] ss:$48 sps:$4 sm:$0xff]   ;;  %v5119_v43 = vld [vmem:[#allocation5 + $0x1a8] ss:$48 sps:$4 sm:$0xff]  }
  0xdf   :  { %3661 = vmatpush1.bf16.xpose.msra.mxu0 %v5044_v44  ;;  %3702 = vmatpush1.bf16.xpose.msra.mxu1 %v5047_v45  ;;  %v5124_v44 = vld [vmem:[#allocation5 + $0x144] ss:$48 sps:$4 sm:$0xff]   ;;  %v5127_v45 = vld [vmem:[#allocation5 + $0x14c] ss:$48 sps:$4 sm:$0xff]  }
  0xe0   :  { %3662 = vmatprep.subr.bf16.mxu0 %v5052_v46  ;;  %3703 = vmatprep.subr.bf16.mxu1 %v5055_v47  ;;  %v5122_v46 = vld [vmem:[#allocation5 + $0x140] ss:$48 sps:$4 sm:$0xff]   ;;  %v5125_v47 = vld [vmem:[#allocation5 + $0x148] ss:$48 sps:$4 sm:$0xff]  }
  0xe7   :  { %3663 = vmatpush2.bf16.xpose.msra.mxu0 %v5050_v48  ;;  %3704 = vmatpush2.bf16.xpose.msra.mxu1 %v5053_v49  ;;  %v5130_v48 = vld [vmem:[#allocation5 + $0xe4] ss:$48 sps:$4 sm:$0xff]   ;;  %v5133_v49 = vld [vmem:[#allocation5 + $0xec] ss:$48 sps:$4 sm:$0xff]  }
  0xe8   :  { %3664 = vmatprep.subr.bf16.mxu0 %v5058_v50  ;;  %3705 = vmatprep.subr.bf16.mxu1 %v5061_v51  ;;  %v5128_v50 = vld [vmem:[#allocation5 + $0xe0] ss:$48 sps:$4 sm:$0xff]   ;;  %v5131_v51 = vld [vmem:[#allocation5 + $0xe8] ss:$48 sps:$4 sm:$0xff]  }
  0xef   :  { %3665 = vmatpush2.bf16.xpose.msra.mxu0 %v5056_v52  ;;  %3706 = vmatpush2.bf16.xpose.msra.mxu1 %v5059_v53  ;;  %v5136_v52 = vld [vmem:[#allocation5 + $0x84] ss:$48 sps:$4 sm:$0xff]   ;;  %v5139_v53 = vld [vmem:[#allocation5 + $0x8c] ss:$48 sps:$4 sm:$0xff]  }
  0xf0   :  { %3666 = vmatprep.subr.bf16.mxu0 %v5064_v54  ;;  %3707 = vmatprep.subr.bf16.mxu1 %v5067_v55  ;;  %v5134_v54 = vld [vmem:[#allocation5 + $0x80] ss:$48 sps:$4 sm:$0xff]   ;;  %v5137_v55 = vld [vmem:[#allocation5 + $0x88] ss:$48 sps:$4 sm:$0xff]  }
  0xf7   :  { %3667 = vmatpush2.bf16.xpose.msra.mxu0 %v5062_v56  ;;  %3708 = vmatpush2.bf16.xpose.msra.mxu1 %v5065_v57  ;;  %v5142_v56 = vld [vmem:[#allocation5 + $0x24] ss:$48 sps:$4 sm:$0xff]   ;;  %v5145_v57 = vld [vmem:[#allocation5 + $0x2c] ss:$48 sps:$4 sm:$0xff]  }
  0xf8   :  { %3668 = vmatprep.subr.bf16.mxu0 %v5070_v58  ;;  %3709 = vmatprep.subr.bf16.mxu1 %v5073_v59  ;;  %v654_v58 = vlaneseq  ;;  %v5140_v59 = vld [vmem:[#allocation5 + $0x20] ss:$48 sps:$4 sm:$0xff]  }
  0xff   :  { %3669 = vmatpush2.bf16.xpose.msra.mxu0 %v5068_v60  ;;  %3710 = vmatpush2.bf16.xpose.msra.mxu1 %v5071_v61  ;;  %v5143_v60 = vld [vmem:[#allocation5 + $0x28] ss:$48 sps:$4 sm:$0xff]   ;;  %v5922_v61 = vshrl.u32 %v654_v58, 7  ;;  %v5199_v58 = vld [vmem:[#allocation5 + $0x8ac] ss:$48 sps:$4 sm:$0xff]  }
 0x100   :  { %3670 = vmatprep.subr.bf16.mxu0 %v5076_v62  ;;  %3711 = vmatprep.subr.bf16.mxu1 %v5079_v63  ;;  %v5148_v62 = vld [vmem:[#allocation5 + $0x5c4] ss:$48 sps:$4 sm:$0xff]   ;;  %v5151_v63 = vld [vmem:[#allocation5 + $0x5cc] ss:$48 sps:$4 sm:$0xff]  }
 0x107   :  { %3671 = vmatpush2.bf16.xpose.msra.mxu0 %v5074_v0  ;;  %3712 = vmatpush2.bf16.xpose.msra.mxu1 %v5077_v1  ;;  %v656_v0 = vsub.s32 0, %v5922_v61  ;;  %v5925_v1 = vld [vmem:[#allocation7] sm:$0x3f] }
 0x108   :  { %3672 = vmatprep.subr.bf16.mxu0 %v5082_v2  ;;  %3713 = vmatprep.subr.bf16.mxu1 %v5085_v3  ;;  %v660_v2 = vsub.s32 1, %v5922_v61 }
 0x109   :  { %v657_v3 = vrot.slane %v5925_v1, %v656_v0  ;;  %v5194_v0 = vld [vmem:[#allocation5 + $0x8a0] ss:$48 sps:$4 sm:$0xff]  }
 0x10f   :  { %3673 = vmatpush2.bf16.xpose.msra.mxu0 %v5080_v4  ;;  %3714 = vmatpush2.bf16.xpose.msra.mxu1 %v5083_v5  ;;  %v5146_v4 = vld [vmem:[#allocation5 + $0x5c0] ss:$48 sps:$4 sm:$0xff]   ;;  %v5149_v5 = vld [vmem:[#allocation5 + $0x5c8] ss:$48 sps:$4 sm:$0xff]  }
 0x110   :  { %3674 = vmatprep.subr.bf16.mxu0 %v5088_v6  ;;  %3715 = vmatprep.subr.bf16.mxu1 %v5091_v7  ;;  %v5154_v6 = vld [vmem:[#allocation5 + $0x564] ss:$48 sps:$4 sm:$0xff]   ;;  %v5157_v7 = vld [vmem:[#allocation5 + $0x56c] ss:$48 sps:$4 sm:$0xff]  }
 0x117   :  { %3675 = vmatpush2.bf16.xpose.msra.mxu0 %v5086_v8  ;;  %3716 = vmatpush2.bf16.xpose.msra.mxu1 %v5089_v9  ;;  %v661_v8 = vrot.slane %v5925_v1, %v660_v2  ;;  %v5197_v2 = vld [vmem:[#allocation5 + $0x8a8] ss:$48 sps:$4 sm:$0xff]  }
 0x118   :  { %3676 = vmatprep.subr.bf16.mxu0 %v5094_v10  ;;  %3717 = vmatprep.subr.bf16.mxu1 %v5097_v13 }
 0x11f   :  { %3677 = vmatpush2.bf16.xpose.msra.mxu0 %v5092_v14  ;;  %3718 = vmatpush2.bf16.xpose.msra.mxu1 %v5095_v15 }
 0x120   :  { %3728 = vmatprep.subr.bf16.mxu0 %v5100_v18  ;;  %3769 = vmatprep.subr.bf16.mxu1 %v5103_v19 }
 0x126   :  { %3679 = vmatmul.mubr.bf16.vlgmr.msra.gmra.mxu0 %v5910_v25  ;;  %3720 = vmatmul.mubr.bf16.vlgmr.msra.gmra.mxu1 %v5912_v26 }
 0x127   :  { %3729 = vmatpush1.bf16.xpose.msra.mxu0 %v5098_v24  ;;  %3770 = vmatpush1.bf16.xpose.msra.mxu1 %v5101_v28  ;;  %v5155_v24 = vld [vmem:[#allocation5 + $0x568] ss:$48 sps:$4 sm:$0xff]  }
 0x128   :  { %3730 = vmatprep.subr.bf16.mxu0 %v5106_v30  ;;  %3771 = vmatprep.subr.bf16.mxu1 %v5109_v31  ;;  %v5160_v31 = vld [vmem:[#allocation5 + $0x504] ss:$48 sps:$4 sm:$0xff]  }
 0x129   :  { %3760 = vmatprep.mubr.bf16.mxu0 %v5914_v32  ;;  %3801 = vmatprep.mubr.bf16.mxu1 %v5916_v33 }
 0x12f   :  { %3731 = vmatpush1.bf16.xpose.msra.mxu0 %v5104_v34  ;;  %3772 = vmatpush1.bf16.xpose.msra.mxu1 %v5107_v35  ;;  %v5163_v34 = vld [vmem:[#allocation5 + $0x50c] ss:$48 sps:$4 sm:$0xff]   ;;  %v5158_v35 = vld [vmem:[#allocation5 + $0x500] ss:$48 sps:$4 sm:$0xff]  }
 0x130   :  { %3732 = vmatprep.subr.bf16.mxu0 %v5112_v36  ;;  %3773 = vmatprep.subr.bf16.mxu1 %v5115_v37  ;;  %v5161_v36 = vld [vmem:[#allocation5 + $0x508] ss:$48 sps:$4 sm:$0xff]   ;;  %v5166_v37 = vld [vmem:[#allocation5 + $0x4a4] ss:$48 sps:$4 sm:$0xff]  }
 0x137   :  { %3733 = vmatpush1.bf16.xpose.msra.mxu0 %v5110_v38  ;;  %3774 = vmatpush1.bf16.xpose.msra.mxu1 %v5113_v39  ;;  %v5169_v38 = vld [vmem:[#allocation5 + $0x4ac] ss:$48 sps:$4 sm:$0xff]   ;;  %v5164_v39 = vld [vmem:[#allocation5 + $0x4a0] ss:$48 sps:$4 sm:$0xff]  }
 0x138   :  { %3734 = vmatprep.subr.bf16.mxu0 %v5118_v40  ;;  %3775 = vmatprep.subr.bf16.mxu1 %v5121_v41  ;;  %v5167_v40 = vld [vmem:[#allocation5 + $0x4a8] ss:$48 sps:$4 sm:$0xff]   ;;  %v5172_v41 = vld [vmem:[#allocation5 + $0x444] ss:$48 sps:$4 sm:$0xff]  }
 0x13f   :  { %3735 = vmatpush1.bf16.xpose.msra.mxu0 %v5116_v42  ;;  %3776 = vmatpush1.bf16.xpose.msra.mxu1 %v5119_v43  ;;  %v5175_v42 = vld [vmem:[#allocation5 + $0x44c] ss:$48 sps:$4 sm:$0xff]   ;;  %v5170_v43 = vld [vmem:[#allocation5 + $0x440] ss:$48 sps:$4 sm:$0xff]  }
 0x140   :  { %3736 = vmatprep.subr.bf16.mxu0 %v5124_v44  ;;  %3777 = vmatprep.subr.bf16.mxu1 %v5127_v45  ;;  %v5173_v44 = vld [vmem:[#allocation5 + $0x448] ss:$48 sps:$4 sm:$0xff]   ;;  %v5178_v45 = vld [vmem:[#allocation5 + $0x3e4] ss:$48 sps:$4 sm:$0xff]  }
 0x147   :  { %3737 = vmatpush1.bf16.xpose.msra.mxu0 %v5122_v46  ;;  %3778 = vmatpush1.bf16.xpose.msra.mxu1 %v5125_v47  ;;  %v5181_v46 = vld [vmem:[#allocation5 + $0x3ec] ss:$48 sps:$4 sm:$0xff]   ;;  %v5176_v47 = vld [vmem:[#allocation5 + $0x3e0] ss:$48 sps:$4 sm:$0xff]  }
 0x148   :  { %3738 = vmatprep.subr.bf16.mxu0 %v5130_v48  ;;  %3779 = vmatprep.subr.bf16.mxu1 %v5133_v49  ;;  %v5179_v48 = vld [vmem:[#allocation5 + $0x3e8] ss:$48 sps:$4 sm:$0xff]   ;;  %v5184_v49 = vld [vmem:[#allocation5 + $0x384] ss:$48 sps:$4 sm:$0xff]  }
 0x14f   :  { %3739 = vmatpush1.bf16.xpose.msra.mxu0 %v5128_v50  ;;  %3780 = vmatpush1.bf16.xpose.msra.mxu1 %v5131_v51  ;;  %v5187_v50 = vld [vmem:[#allocation5 + $0x38c] ss:$48 sps:$4 sm:$0xff]   ;;  %v5182_v51 = vld [vmem:[#allocation5 + $0x380] ss:$48 sps:$4 sm:$0xff]  }
 0x150   :  { %3740 = vmatprep.subr.bf16.mxu0 %v5136_v52  ;;  %3781 = vmatprep.subr.bf16.mxu1 %v5139_v53  ;;  %v5185_v52 = vld [vmem:[#allocation5 + $0x388] ss:$48 sps:$4 sm:$0xff]   ;;  %v5190_v53 = vld [vmem:[#allocation5 + $0x324] ss:$48 sps:$4 sm:$0xff]  }
 0x157   :  { %3741 = vmatpush1.bf16.xpose.msra.mxu0 %v5134_v54  ;;  %3782 = vmatpush1.bf16.xpose.msra.mxu1 %v5137_v55  ;;  %v5193_v54 = vld [vmem:[#allocation5 + $0x32c] ss:$48 sps:$4 sm:$0xff]   ;;  %v5188_v55 = vld [vmem:[#allocation5 + $0x320] ss:$48 sps:$4 sm:$0xff]  }
 0x158   :  { %3742 = vmatprep.subr.bf16.mxu0 %v5142_v56  ;;  %3783 = vmatprep.subr.bf16.mxu1 %v5145_v57  ;;  %v5191_v56 = vld [vmem:[#allocation5 + $0x328] ss:$48 sps:$4 sm:$0xff]   ;;  %v5196_v57 = vld [vmem:[#allocation5 + $0x8a4] ss:$48 sps:$4 sm:$0xff]  }
 0x15f   :  { %3743 = vmatpush1.bf16.xpose.msra.mxu0 %v5140_v59  ;;  %3784 = vmatpush1.bf16.xpose.msra.mxu1 %v5143_v60  ;;  %v60_v59 = vld [vmem:[#allocation2 + $0x40] sm:$0xff]  ;;  %v62_v60 = vld [vmem:[#allocation2 + $0x50] sm:$0xff] }
 0x160   :  { %3744 = vmatprep.subr.bf16.mxu0 %v5148_v62  ;;  %3785 = vmatprep.subr.bf16.mxu1 %v5151_v63  ;;  %v5934_v62 = vpack.c.bf16 %v60_v59, %v60_v59  ;;  %v5936_v63 = vpack.c.bf16 %v62_v60, %v62_v60  ;;  %v5248_v59 = vld [vmem:[#allocation5 + $0xb40] ss:$48 sps:$4 sm:$0xff]   ;;  %v5251_v60 = vld [vmem:[#allocation5 + $0xb48] ss:$48 sps:$4 sm:$0xff]  }
 0x166   :  { %v3598_v9 = vpop.f32.mrf.mxu0  ;;  %v3639_v10 = vpop.f32.mrf.mxu1 }
 0x167   :  { %v3599_v13 = vadd.f32 %v3598_v9, %v657_v3  ;;  %3745 = vmatpush2.bf16.xpose.msra.mxu0 %v5146_v4  ;;  %3786 = vmatpush2.bf16.xpose.msra.mxu1 %v5149_v5  ;;  %v5202_v3 = vld [vmem:[#allocation5 + $0x844] ss:$48 sps:$4 sm:$0xff]   ;;  %v5205_v4 = vld [vmem:[#allocation5 + $0x84c] ss:$48 sps:$4 sm:$0xff]   ;;  %v5200_v5 = vld [vmem:[#allocation5 + $0x840] ss:$48 sps:$4 sm:$0xff]  }
 0x168   :  { %v3600_v14 = vpop.f32.mrf.mxu0  ;;  %v3641_v15 = vpop.f32.mrf.mxu1  ;;  %3746 = vmatprep.subr.bf16.mxu0 %v5154_v6  ;;  %3787 = vmatprep.subr.bf16.mxu1 %v5157_v7  ;;  %v5203_v6 = vld [vmem:[#allocation5 + $0x848] ss:$48 sps:$4 sm:$0xff]   ;;  %v5208_v7 = vld [vmem:[#allocation5 + $0x7e4] ss:$48 sps:$4 sm:$0xff]   ;;  %v5206_v9 = vld [vmem:[#allocation5 + $0x7e0] ss:$48 sps:$4 sm:$0xff]  }
 0x169   :  { %v5930_v18 = vadd.f32 %v3639_v10, %v3599_v13  ;;  %v3601_v19 = vadd.f32 %v3600_v14, %v661_v8  ;;  %v5211_v8 = vld [vmem:[#allocation5 + $0x7ec] ss:$48 sps:$4 sm:$0xff]   ;;  %v5209_v10 = vld [vmem:[#allocation5 + $0x7e8] ss:$48 sps:$4 sm:$0xff]   ;;  %v5214_v13 = vld [vmem:[#allocation5 + $0x784] ss:$48 sps:$4 sm:$0xff]  }
 0x16a   :  { %v3602_v20 = vpop.f32.mrf.mxu0  ;;  %v3643_v21 = vpop.f32.mrf.mxu1  ;;  %v5217_v14 = vld [vmem:[#allocation5 + $0x78c] ss:$48 sps:$4 sm:$0xff]  }
 0x16b   :  { %v5932_v22 = vadd.f32 %v3641_v15, %v3601_v19  ;;  %v5212_v15 = vld [vmem:[#allocation5 + $0x780] ss:$48 sps:$4 sm:$0xff]   ;;  %v5215_v19 = vld [vmem:[#allocation5 + $0x788] ss:$48 sps:$4 sm:$0xff]   ;;  %v5220_v20 = vld [vmem:[#allocation5 + $0x724] ss:$48 sps:$4 sm:$0xff]  }
 0x16c   :  { %v3603_v28 = vpop.f32.mrf.mxu0  ;;  %v3644_v30 = vpop.f32.mrf.mxu1  ;;  %v5223_v21 = vld [vmem:[#allocation5 + $0x72c] ss:$48 sps:$4 sm:$0xff]  }
 0x16d   :  { %v5226_v28 = vld [vmem:[#allocation5 + $0x6c4] ss:$48 sps:$4 sm:$0xff]   ;;  %v5229_v30 = vld [vmem:[#allocation5 + $0x6cc] ss:$48 sps:$4 sm:$0xff]  }
 0x16f   :  { %3747 = vmatpush2.bf16.xpose.msra.mxu0 %v5152_v23  ;;  %3788 = vmatpush2.bf16.xpose.msra.mxu1 %v5155_v24  ;;  %v5218_v23 = vld [vmem:[#allocation5 + $0x720] ss:$48 sps:$4 sm:$0xff]   ;;  %v5221_v24 = vld [vmem:[#allocation5 + $0x728] ss:$48 sps:$4 sm:$0xff]  }
 0x170   :  { %3748 = vmatprep.subr.bf16.mxu0 %v5160_v31  ;;  %3789 = vmatprep.subr.bf16.mxu1 %v5163_v34  ;;  %v5224_v31 = vld [vmem:[#allocation5 + $0x6c0] ss:$48 sps:$4 sm:$0xff]   ;;  %v5227_v34 = vld [vmem:[#allocation5 + $0x6c8] ss:$48 sps:$4 sm:$0xff]  }
 0x177   :  { %3749 = vmatpush2.bf16.xpose.msra.mxu0 %v5158_v35  ;;  %3790 = vmatpush2.bf16.xpose.msra.mxu1 %v5161_v36  ;;  %v5232_v35 = vld [vmem:[#allocation5 + $0x664] ss:$48 sps:$4 sm:$0xff]   ;;  %v5235_v36 = vld [vmem:[#allocation5 + $0x66c] ss:$48 sps:$4 sm:$0xff]  }
 0x178   :  { %3750 = vmatprep.subr.bf16.mxu0 %v5166_v37  ;;  %3791 = vmatprep.subr.bf16.mxu1 %v5169_v38  ;;  %v5230_v37 = vld [vmem:[#allocation5 + $0x660] ss:$48 sps:$4 sm:$0xff]   ;;  %v5233_v38 = vld [vmem:[#allocation5 + $0x668] ss:$48 sps:$4 sm:$0xff]  }
 0x17f   :  { %3751 = vmatpush2.bf16.xpose.msra.mxu0 %v5164_v39  ;;  %3792 = vmatpush2.bf16.xpose.msra.mxu1 %v5167_v40  ;;  %v5238_v39 = vld [vmem:[#allocation5 + $0x604] ss:$48 sps:$4 sm:$0xff]   ;;  %v5241_v40 = vld [vmem:[#allocation5 + $0x60c] ss:$48 sps:$4 sm:$0xff]  }
 0x180   :  { %3752 = vmatprep.subr.bf16.mxu0 %v5172_v41  ;;  %3793 = vmatprep.subr.bf16.mxu1 %v5175_v42  ;;  %v5236_v41 = vld [vmem:[#allocation5 + $0x600] ss:$48 sps:$4 sm:$0xff]   ;;  %v5239_v42 = vld [vmem:[#allocation5 + $0x608] ss:$48 sps:$4 sm:$0xff]  }
 0x187   :  { %3753 = vmatpush2.bf16.xpose.msra.mxu0 %v5170_v43  ;;  %3794 = vmatpush2.bf16.xpose.msra.mxu1 %v5173_v44  ;;  %v5244_v43 = vld [vmem:[#allocation5 + $0xba4] ss:$48 sps:$4 sm:$0xff]   ;;  %v5247_v44 = vld [vmem:[#allocation5 + $0xbac] ss:$48 sps:$4 sm:$0xff]  }
 0x188   :  { %3754 = vmatprep.subr.bf16.mxu0 %v5178_v45  ;;  %3795 = vmatprep.subr.bf16.mxu1 %v5181_v46  ;;  %v5242_v45 = vld [vmem:[#allocation5 + $0xba0] ss:$48 sps:$4 sm:$0xff]   ;;  %v5245_v46 = vld [vmem:[#allocation5 + $0xba8] ss:$48 sps:$4 sm:$0xff]  }
 0x18f   :  { %3755 = vmatpush2.bf16.xpose.msra.mxu0 %v5176_v47  ;;  %3796 = vmatpush2.bf16.xpose.msra.mxu1 %v5179_v48  ;;  %v5250_v47 = vld [vmem:[#allocation5 + $0xb44] ss:$48 sps:$4 sm:$0xff]   ;;  %v5253_v48 = vld [vmem:[#allocation5 + $0xb4c] ss:$48 sps:$4 sm:$0xff]  }
 0x190   :  { %3756 = vmatprep.subr.bf16.mxu0 %v5184_v49  ;;  %3797 = vmatprep.subr.bf16.mxu1 %v5187_v50 }
 0x197   :  { %3757 = vmatpush2.bf16.xpose.msra.mxu0 %v5182_v51  ;;  %3798 = vmatpush2.bf16.xpose.msra.mxu1 %v5185_v52 }
 0x198   :  { %3758 = vmatprep.subr.bf16.mxu0 %v5190_v53  ;;  %3799 = vmatprep.subr.bf16.mxu1 %v5193_v54 }
 0x19f   :  { %3759 = vmatpush2.bf16.xpose.msra.mxu0 %v5188_v55  ;;  %3800 = vmatpush2.bf16.xpose.msra.mxu1 %v5191_v56 }
 0x1a0   :  { %3810 = vmatprep.subr.bf16.mxu0 %v5196_v57  ;;  %3851 = vmatprep.subr.bf16.mxu1 %v5199_v58 }
 0x1a6   :  { %3761 = vmatmul.mubr.bf16.vlgmr.msra.gmra.mxu0 %v5934_v62  ;;  %3802 = vmatmul.mubr.bf16.vlgmr.msra.gmra.mxu1 %v5936_v63 }
 0x1a7   :  { %3811 = vmatpush1.bf16.xpose.msra.mxu0 %v5194_v0  ;;  %3852 = vmatpush1.bf16.xpose.msra.mxu1 %v5197_v2 }
 0x1a8   :  { %3812 = vmatprep.subr.bf16.mxu0 %v5202_v3  ;;  %3853 = vmatprep.subr.bf16.mxu1 %v5205_v4  ;;  %v5256_v3 = vld [vmem:[#allocation5 + $0xae4] ss:$48 sps:$4 sm:$0xff]   ;;  %v5254_v4 = vld [vmem:[#allocation5 + $0xae0] ss:$48 sps:$4 sm:$0xff]  }
 0x1a9   :  { %3842 = vmatprep.mubr.bf16.mxu0 %v5892_v27  ;;  %3883 = vmatprep.mubr.bf16.mxu1 %v5894_v29 }
 0x1af   :  { %3813 = vmatpush1.bf16.xpose.msra.mxu0 %v5200_v5  ;;  %3854 = vmatpush1.bf16.xpose.msra.mxu1 %v5203_v6  ;;  %v5257_v5 = vld [vmem:[#allocation5 + $0xae8] ss:$48 sps:$4 sm:$0xff]   ;;  %v5262_v6 = vld [vmem:[#allocation5 + $0xa84] ss:$48 sps:$4 sm:$0xff]  }
 0x1b0   :  { %3814 = vmatprep.subr.bf16.mxu0 %v5208_v7  ;;  %3855 = vmatprep.subr.bf16.mxu1 %v5211_v8  ;;  %v5265_v7 = vld [vmem:[#allocation5 + $0xa8c] ss:$48 sps:$4 sm:$0xff]   ;;  %v5263_v8 = vld [vmem:[#allocation5 + $0xa88] ss:$48 sps:$4 sm:$0xff]  }
 0x1b7   :  { %3815 = vmatpush1.bf16.xpose.msra.mxu0 %v5206_v9  ;;  %3856 = vmatpush1.bf16.xpose.msra.mxu1 %v5209_v10  ;;  %v5268_v9 = vld [vmem:[#allocation5 + $0xa24] ss:$48 sps:$4 sm:$0xff]   ;;  %v5271_v10 = vld [vmem:[#allocation5 + $0xa2c] ss:$48 sps:$4 sm:$0xff]  }
 0x1b8   :  { %3816 = vmatprep.subr.bf16.mxu0 %v5214_v13  ;;  %3857 = vmatprep.subr.bf16.mxu1 %v5217_v14  ;;  %v5266_v13 = vld [vmem:[#allocation5 + $0xa20] ss:$48 sps:$4 sm:$0xff]   ;;  %v5269_v14 = vld [vmem:[#allocation5 + $0xa28] ss:$48 sps:$4 sm:$0xff]  }
 0x1bf   :  { %3817 = vmatpush1.bf16.xpose.msra.mxu0 %v5212_v15  ;;  %3858 = vmatpush1.bf16.xpose.msra.mxu1 %v5215_v19  ;;  %v5274_v15 = vld [vmem:[#allocation5 + $0x9c4] ss:$48 sps:$4 sm:$0xff]   ;;  %v5277_v19 = vld [vmem:[#allocation5 + $0x9cc] ss:$48 sps:$4 sm:$0xff]  }
 0x1c0   :  { %3818 = vmatprep.subr.bf16.mxu0 %v5220_v20  ;;  %3859 = vmatprep.subr.bf16.mxu1 %v5223_v21  ;;  %v5272_v20 = vld [vmem:[#allocation5 + $0x9c0] ss:$48 sps:$4 sm:$0xff]   ;;  %v5275_v21 = vld [vmem:[#allocation5 + $0x9c8] ss:$48 sps:$4 sm:$0xff]  }
 0x1c7   :  { %3819 = vmatpush1.bf16.xpose.msra.mxu0 %v5218_v23  ;;  %3860 = vmatpush1.bf16.xpose.msra.mxu1 %v5221_v24  ;;  %v5280_v23 = vld [vmem:[#allocation5 + $0x964] ss:$48 sps:$4 sm:$0xff]   ;;  %v5283_v24 = vld [vmem:[#allocation5 + $0x96c] ss:$48 sps:$4 sm:$0xff]  }
 0x1c8   :  { %3820 = vmatprep.subr.bf16.mxu0 %v5226_v28  ;;  %3861 = vmatprep.subr.bf16.mxu1 %v5229_v30  ;;  %v5278_v28 = vld [vmem:[#allocation5 + $0x960] ss:$48 sps:$4 sm:$0xff]   ;;  %v5281_v30 = vld [vmem:[#allocation5 + $0x968] ss:$48 sps:$4 sm:$0xff]  }
 0x1cf   :  { %3821 = vmatpush1.bf16.xpose.msra.mxu0 %v5224_v31  ;;  %3862 = vmatpush1.bf16.xpose.msra.mxu1 %v5227_v34  ;;  %v5286_v31 = vld [vmem:[#allocation5 + $0x904] ss:$48 sps:$4 sm:$0xff]   ;;  %v5289_v34 = vld [vmem:[#allocation5 + $0x90c] ss:$48 sps:$4 sm:$0xff]  }
 0x1d0   :  { %3822 = vmatprep.subr.bf16.mxu0 %v5232_v35  ;;  %3863 = vmatprep.subr.bf16.mxu1 %v5235_v36  ;;  %v5284_v35 = vld [vmem:[#allocation5 + $0x900] ss:$48 sps:$4 sm:$0xff]   ;;  %v5287_v36 = vld [vmem:[#allocation5 + $0x908] ss:$48 sps:$4 sm:$0xff]  }
 0x1d7   :  { %3823 = vmatpush1.bf16.xpose.msra.mxu0 %v5230_v37  ;;  %3864 = vmatpush1.bf16.xpose.msra.mxu1 %v5233_v38  ;;  %v5292_v37 = vld [vmem:[#allocation5 + $0x8b4] ss:$48 sps:$4 sm:$0xff]   ;;  %v5295_v38 = vld [vmem:[#allocation5 + $0x8bc] ss:$48 sps:$4 sm:$0xff]  }
 0x1d8   :  { %3824 = vmatprep.subr.bf16.mxu0 %v5238_v39  ;;  %3865 = vmatprep.subr.bf16.mxu1 %v5241_v40  ;;  %v5290_v39 = vld [vmem:[#allocation5 + $0x8b0] ss:$48 sps:$4 sm:$0xff]   ;;  %v5293_v40 = vld [vmem:[#allocation5 + $0x8b8] ss:$48 sps:$4 sm:$0xff]  }
 0x1df   :  { %3825 = vmatpush1.bf16.xpose.msra.mxu0 %v5236_v41  ;;  %3866 = vmatpush1.bf16.xpose.msra.mxu1 %v5239_v42  ;;  %v5298_v41 = vld [vmem:[#allocation5 + $0x854] ss:$48 sps:$4 sm:$0xff]   ;;  %v5301_v42 = vld [vmem:[#allocation5 + $0x85c] ss:$48 sps:$4 sm:$0xff]  }
 0x1e0   :  { %3826 = vmatprep.subr.bf16.mxu0 %v5244_v43  ;;  %3867 = vmatprep.subr.bf16.mxu1 %v5247_v44  ;;  %v5296_v43 = vld [vmem:[#allocation5 + $0x850] ss:$48 sps:$4 sm:$0xff]   ;;  %v5299_v44 = vld [vmem:[#allocation5 + $0x858] ss:$48 sps:$4 sm:$0xff]  }
 0x1e6   :  { %v3680_v49 = vpop.f32.mrf.mxu0  ;;  %v3721_v50 = vpop.f32.mrf.mxu1 }
 0x1e7   :  { %v3681_v51 = vadd.f32 %v3680_v49, %v5930_v18  ;;  %3827 = vmatpush2.bf16.xpose.msra.mxu0 %v5242_v45  ;;  %3868 = vmatpush2.bf16.xpose.msra.mxu1 %v5245_v46  ;;  %v5259_v18 = vld [vmem:[#allocation5 + $0xaec] ss:$48 sps:$4 sm:$0xff]   ;;  %v5304_v45 = vld [vmem:[#allocation5 + $0x7f4] ss:$48 sps:$4 sm:$0xff]  }
 0x1e8   :  { %v3682_v52 = vpop.f32.mrf.mxu0  ;;  %v3723_v53 = vpop.f32.mrf.mxu1  ;;  %3828 = vmatprep.subr.bf16.mxu0 %v5250_v47  ;;  %3869 = vmatprep.subr.bf16.mxu1 %v5253_v48  ;;  %v5307_v46 = vld [vmem:[#allocation5 + $0x7fc] ss:$48 sps:$4 sm:$0xff]   ;;  %v5302_v47 = vld [vmem:[#allocation5 + $0x7f0] ss:$48 sps:$4 sm:$0xff]   ;;  %v5305_v48 = vld [vmem:[#allocation5 + $0x7f8] ss:$48 sps:$4 sm:$0xff]  }
 0x1e9   :  { %v5943_v54 = vadd.f32 %v3721_v50, %v3681_v51  ;;  %v3683_v55 = vadd.f32 %v3682_v52, %v5932_v22  ;;  %v5260_v22 = vld [vmem:[#allocation5 + $0xa80] ss:$48 sps:$4 sm:$0xff]   ;;  %v5310_v49 = vld [vmem:[#allocation5 + $0x794] ss:$48 sps:$4 sm:$0xff]   ;;  %v5313_v50 = vld [vmem:[#allocation5 + $0x79c] ss:$48 sps:$4 sm:$0xff]  }
 0x1ea   :  { %v3684_v56 = vpop.f32.mrf.mxu0  ;;  %v3725_v57 = vpop.f32.mrf.mxu1  ;;  %v5308_v51 = vld [vmem:[#allocation5 + $0x790] ss:$48 sps:$4 sm:$0xff]   ;;  %v5311_v52 = vld [vmem:[#allocation5 + $0x798] ss:$48 sps:$4 sm:$0xff]  }
 0x1eb   :  { %v5946_v58 = vadd.f32 %v3723_v53, %v3683_v55  ;;  %v5316_v53 = vld [vmem:[#allocation5 + $0x734] ss:$48 sps:$4 sm:$0xff]   ;;  %v5319_v55 = vld [vmem:[#allocation5 + $0x73c] ss:$48 sps:$4 sm:$0xff]   ;;  %v5314_v56 = vld [vmem:[#allocation5 + $0x730] ss:$48 sps:$4 sm:$0xff]  }
 0x1ec   :  { %v3685_v0 = vpop.f32.mrf.mxu0  ;;  %v3726_v2 = vpop.f32.mrf.mxu1  ;;  %v5317_v57 = vld [vmem:[#allocation5 + $0x738] ss:$48 sps:$4 sm:$0xff]  }
 0x1ed   :  { %v5320_v0 = vld [vmem:[#allocation5 + $0x6d0] ss:$48 sps:$4 sm:$0xff]   ;;  %v5323_v2 = vld [vmem:[#allocation5 + $0x6d8] ss:$48 sps:$4 sm:$0xff]  }
 0x1ef   :  { %3829 = vmatpush2.bf16.xpose.msra.mxu0 %v5248_v59  ;;  %3870 = vmatpush2.bf16.xpose.msra.mxu1 %v5251_v60  ;;  %v5322_v59 = vld [vmem:[#allocation5 + $0x6d4] ss:$48 sps:$4 sm:$0xff]   ;;  %v5325_v60 = vld [vmem:[#allocation5 + $0x6dc] ss:$48 sps:$4 sm:$0xff]  }
 0x1f0   :  { %3830 = vmatprep.subr.bf16.mxu0 %v5256_v3  ;;  %3871 = vmatprep.subr.bf16.mxu1 %v5259_v18  ;;  %v5328_v3 = vld [vmem:[#allocation5 + $0x674] ss:$48 sps:$4 sm:$0xff]   ;;  %v5331_v18 = vld [vmem:[#allocation5 + $0x67c] ss:$48 sps:$4 sm:$0xff]  }
 0x1f7   :  { %3831 = vmatpush2.bf16.xpose.msra.mxu0 %v5254_v4  ;;  %3872 = vmatpush2.bf16.xpose.msra.mxu1 %v5257_v5  ;;  %v5326_v4 = vld [vmem:[#allocation5 + $0x670] ss:$48 sps:$4 sm:$0xff]   ;;  %v5329_v5 = vld [vmem:[#allocation5 + $0x678] ss:$48 sps:$4 sm:$0xff]  }
 0x1f8   :  { %3832 = vmatprep.subr.bf16.mxu0 %v5262_v6  ;;  %3873 = vmatprep.subr.bf16.mxu1 %v5265_v7  ;;  %v5334_v6 = vld [vmem:[#allocation5 + $0x614] ss:$48 sps:$4 sm:$0xff]   ;;  %v5337_v7 = vld [vmem:[#allocation5 + $0x61c] ss:$48 sps:$4 sm:$0xff]  }
 0x1ff   :  { %3833 = vmatpush2.bf16.xpose.msra.mxu0 %v5260_v22  ;;  %3874 = vmatpush2.bf16.xpose.msra.mxu1 %v5263_v8  ;;  %v5332_v22 = vld [vmem:[#allocation5 + $0x610] ss:$48 sps:$4 sm:$0xff]   ;;  %v5335_v8 = vld [vmem:[#allocation5 + $0x618] ss:$48 sps:$4 sm:$0xff]  }
 0x200   :  { %3834 = vmatprep.subr.bf16.mxu0 %v5268_v9  ;;  %3875 = vmatprep.subr.bf16.mxu1 %v5271_v10  ;;  %v5340_v9 = vld [vmem:[#allocation5 + $0xbb4] ss:$48 sps:$4 sm:$0xff]   ;;  %v5343_v10 = vld [vmem:[#allocation5 + $0xbbc] ss:$48 sps:$4 sm:$0xff]  }
 0x207   :  { %3835 = vmatpush2.bf16.xpose.msra.mxu0 %v5266_v13  ;;  %3876 = vmatpush2.bf16.xpose.msra.mxu1 %v5269_v14  ;;  %v5338_v13 = vld [vmem:[#allocation5 + $0xbb0] ss:$48 sps:$4 sm:$0xff]   ;;  %v5341_v14 = vld [vmem:[#allocation5 + $0xbb8] ss:$48 sps:$4 sm:$0xff]  }
 0x208   :  { %3836 = vmatprep.subr.bf16.mxu0 %v5274_v15  ;;  %3877 = vmatprep.subr.bf16.mxu1 %v5277_v19  ;;  %v5346_v15 = vld [vmem:[#allocation5 + $0xb54] ss:$48 sps:$4 sm:$0xff]   ;;  %v5349_v19 = vld [vmem:[#allocation5 + $0xb5c] ss:$48 sps:$4 sm:$0xff]  }
 0x20f   :  { %3837 = vmatpush2.bf16.xpose.msra.mxu0 %v5272_v20  ;;  %3878 = vmatpush2.bf16.xpose.msra.mxu1 %v5275_v21 }
 0x210   :  { %3838 = vmatprep.subr.bf16.mxu0 %v5280_v23  ;;  %3879 = vmatprep.subr.bf16.mxu1 %v5283_v24 }
 0x217   :  { %3839 = vmatpush2.bf16.xpose.msra.mxu0 %v5278_v28  ;;  %3880 = vmatpush2.bf16.xpose.msra.mxu1 %v5281_v30 }
 0x218   :  { %3840 = vmatprep.subr.bf16.mxu0 %v5286_v31  ;;  %3881 = vmatprep.subr.bf16.mxu1 %v5289_v34 }
 0x21f   :  { %3841 = vmatpush2.bf16.xpose.msra.mxu0 %v5284_v35  ;;  %3882 = vmatpush2.bf16.xpose.msra.mxu1 %v5287_v36 }
 0x220   :  { %3892 = vmatprep.subr.bf16.mxu0 %v5292_v37  ;;  %3933 = vmatprep.subr.bf16.mxu1 %v5295_v38  ;;  %v5344_v37 = vld [vmem:[#allocation5 + $0xb50] ss:$48 sps:$4 sm:$0xff]   ;;  %v5347_v38 = vld [vmem:[#allocation5 + $0xb58] ss:$48 sps:$4 sm:$0xff]  }
 0x226   :  { %3843 = vmatmul.mubr.bf16.vlgmr.msra.gmra.mxu0 %v5898_v11  ;;  %3884 = vmatmul.mubr.bf16.vlgmr.msra.gmra.mxu1 %v5900_v12 }
 0x227   :  { %3893 = vmatpush1.bf16.xpose.msra.mxu0 %v5290_v39  ;;  %3934 = vmatpush1.bf16.xpose.msra.mxu1 %v5293_v40 }
 0x228   :  { %3894 = vmatprep.subr.bf16.mxu0 %v5298_v41  ;;  %3935 = vmatprep.subr.bf16.mxu1 %v5301_v42  ;;  %v5352_v41 = vld [vmem:[#allocation5 + $0xaf4] ss:$48 sps:$4 sm:$0xff]   ;;  %v5355_v42 = vld [vmem:[#allocation5 + $0xafc] ss:$48 sps:$4 sm:$0xff]  }
 0x229   :  { %3924 = vmatprep.mubr.bf16.mxu0 %v5902_v16  ;;  %3965 = vmatprep.mubr.bf16.mxu1 %v5904_v17 }
 0x22f   :  { %3895 = vmatpush1.bf16.xpose.msra.mxu0 %v5296_v43  ;;  %3936 = vmatpush1.bf16.xpose.msra.mxu1 %v5299_v44  ;;  %v5353_v43 = vld [vmem:[#allocation5 + $0xaf8] ss:$48 sps:$4 sm:$0xff]   ;;  %v5358_v44 = vld [vmem:[#allocation5 + $0xa94] ss:$48 sps:$4 sm:$0xff]  }
 0x230   :  { %3896 = vmatprep.subr.bf16.mxu0 %v5304_v45  ;;  %3937 = vmatprep.subr.bf16.mxu1 %v5307_v46  ;;  %v5361_v45 = vld [vmem:[#allocation5 + $0xa9c] ss:$48 sps:$4 sm:$0xff]   ;;  %v5359_v46 = vld [vmem:[#allocation5 + $0xa98] ss:$48 sps:$4 sm:$0xff]  }
 0x237   :  { %3897 = vmatpush1.bf16.xpose.msra.mxu0 %v5302_v47  ;;  %3938 = vmatpush1.bf16.xpose.msra.mxu1 %v5305_v48  ;;  %v5364_v47 = vld [vmem:[#allocation5 + $0xa34] ss:$48 sps:$4 sm:$0xff]   ;;  %v5367_v48 = vld [vmem:[#allocation5 + $0xa3c] ss:$48 sps:$4 sm:$0xff]  }
 0x238   :  { %3898 = vmatprep.subr.bf16.mxu0 %v5310_v49  ;;  %3939 = vmatprep.subr.bf16.mxu1 %v5313_v50  ;;  %v5362_v49 = vld [vmem:[#allocation5 + $0xa30] ss:$48 sps:$4 sm:$0xff]   ;;  %v5365_v50 = vld [vmem:[#allocation5 + $0xa38] ss:$48 sps:$4 sm:$0xff]  }
 0x23f   :  { %3899 = vmatpush1.bf16.xpose.msra.mxu0 %v5308_v51  ;;  %3940 = vmatpush1.bf16.xpose.msra.mxu1 %v5311_v52  ;;  %v5370_v51 = vld [vmem:[#allocation5 + $0x9d4] ss:$48 sps:$4 sm:$0xff]   ;;  %v5373_v52 = vld [vmem:[#allocation5 + $0x9dc] ss:$48 sps:$4 sm:$0xff]  }
 0x240   :  { %3900 = vmatprep.subr.bf16.mxu0 %v5316_v53  ;;  %3941 = vmatprep.subr.bf16.mxu1 %v5319_v55  ;;  %v5368_v53 = vld [vmem:[#allocation5 + $0x9d0] ss:$48 sps:$4 sm:$0xff]   ;;  %v5371_v55 = vld [vmem:[#allocation5 + $0x9d8] ss:$48 sps:$4 sm:$0xff]  }
 0x247   :  { %3901 = vmatpush1.bf16.xpose.msra.mxu0 %v5314_v56  ;;  %3942 = vmatpush1.bf16.xpose.msra.mxu1 %v5317_v57  ;;  %v5376_v56 = vld [vmem:[#allocation5 + $0x974] ss:$48 sps:$4 sm:$0xff]   ;;  %v5379_v57 = vld [vmem:[#allocation5 + $0x97c] ss:$48 sps:$4 sm:$0xff]  }
 0x248   :  { %3902 = vmatprep.subr.bf16.mxu0 %v5322_v59  ;;  %3943 = vmatprep.subr.bf16.mxu1 %v5325_v60  ;;  %v5374_v59 = vld [vmem:[#allocation5 + $0x970] ss:$48 sps:$4 sm:$0xff]   ;;  %v5377_v60 = vld [vmem:[#allocation5 + $0x978] ss:$48 sps:$4 sm:$0xff]  }
 0x24f   :  { %3903 = vmatpush1.bf16.xpose.msra.mxu0 %v5320_v0  ;;  %3944 = vmatpush1.bf16.xpose.msra.mxu1 %v5323_v2  ;;  %v5382_v0 = vld [vmem:[#allocation5 + $0x914] ss:$48 sps:$4 sm:$0xff]   ;;  %v5385_v2 = vld [vmem:[#allocation5 + $0x91c] ss:$48 sps:$4 sm:$0xff]  }
 0x250   :  { %3904 = vmatprep.subr.bf16.mxu0 %v5328_v3  ;;  %3945 = vmatprep.subr.bf16.mxu1 %v5331_v18  ;;  %v5380_v3 = vld [vmem:[#allocation5 + $0x910] ss:$48 sps:$4 sm:$0xff]   ;;  %v5383_v18 = vld [vmem:[#allocation5 + $0x918] ss:$48 sps:$4 sm:$0xff]  }
 0x257   :  { %3905 = vmatpush1.bf16.xpose.msra.mxu0 %v5326_v4  ;;  %3946 = vmatpush1.bf16.xpose.msra.mxu1 %v5329_v5  ;;  %v5388_v4 = vld [vmem:[#allocation5 + $0x8c4] ss:$48 sps:$4 sm:$0xff]   ;;  %v5391_v5 = vld [vmem:[#allocation5 + $0x8cc] ss:$48 sps:$4 sm:$0xff]  }
 0x258   :  { %3906 = vmatprep.subr.bf16.mxu0 %v5334_v6  ;;  %3947 = vmatprep.subr.bf16.mxu1 %v5337_v7  ;;  %v5386_v6 = vld [vmem:[#allocation5 + $0x8c0] ss:$48 sps:$4 sm:$0xff]   ;;  %v5389_v7 = vld [vmem:[#allocation5 + $0x8c8] ss:$48 sps:$4 sm:$0xff]  }
 0x25f   :  { %3907 = vmatpush1.bf16.xpose.msra.mxu0 %v5332_v22  ;;  %3948 = vmatpush1.bf16.xpose.msra.mxu1 %v5335_v8  ;;  %v5394_v22 = vld [vmem:[#allocation5 + $0x864] ss:$48 sps:$4 sm:$0xff]   ;;  %v5397_v8 = vld [vmem:[#allocation5 + $0x86c] ss:$48 sps:$4 sm:$0xff]  }
 0x260   :  { %3908 = vmatprep.subr.bf16.mxu0 %v5340_v9  ;;  %3949 = vmatprep.subr.bf16.mxu1 %v5343_v10  ;;  %v5392_v9 = vld [vmem:[#allocation5 + $0x860] ss:$48 sps:$4 sm:$0xff]   ;;  %v5395_v10 = vld [vmem:[#allocation5 + $0x868] ss:$48 sps:$4 sm:$0xff]  }
 0x266   :  { %v3762_v20 = vpop.f32.mrf.mxu0  ;;  %v3803_v21 = vpop.f32.mrf.mxu1 }
 0x267   :  { %v3763_v23 = vadd.f32 %v3762_v20, %v5943_v54  ;;  %3909 = vmatpush2.bf16.xpose.msra.mxu0 %v5338_v13  ;;  %3950 = vmatpush2.bf16.xpose.msra.mxu1 %v5341_v14  ;;  %v5350_v54 = vld [vmem:[#allocation5 + $0xaf0] ss:$48 sps:$4 sm:$0xff]   ;;  %v5400_v13 = vld [vmem:[#allocation5 + $0x804] ss:$48 sps:$4 sm:$0xff]   ;;  %v5403_v14 = vld [vmem:[#allocation5 + $0x80c] ss:$48 sps:$4 sm:$0xff]  }
 0x268   :  { %v3764_v24 = vpop.f32.mrf.mxu0  ;;  %v3805_v28 = vpop.f32.mrf.mxu1  ;;  %3910 = vmatprep.subr.bf16.mxu0 %v5346_v15  ;;  %3951 = vmatprep.subr.bf16.mxu1 %v5349_v19  ;;  %v5398_v15 = vld [vmem:[#allocation5 + $0x800] ss:$48 sps:$4 sm:$0xff]   ;;  %v5401_v19 = vld [vmem:[#allocation5 + $0x808] ss:$48 sps:$4 sm:$0xff]   ;;  %v5406_v20 = vld [vmem:[#allocation5 + $0x7a4] ss:$48 sps:$4 sm:$0xff]  }
 0x269   :  { %v3804_v30 = vadd.f32 %v3803_v21, %v3763_v23  ;;  %v3765_v31 = vadd.f32 %v3764_v24, %v5946_v58  ;;  %v5356_v58 = vld [vmem:[#allocation5 + $0xa90] ss:$48 sps:$4 sm:$0xff]   ;;  %v5409_v21 = vld [vmem:[#allocation5 + $0x7ac] ss:$48 sps:$4 sm:$0xff]   ;;  %v5407_v24 = vld [vmem:[#allocation5 + $0x7a8] ss:$48 sps:$4 sm:$0xff]  }
 0x26a   :  { %v3766_v34 = vpop.f32.mrf.mxu0  ;;  %v3807_v35 = vpop.f32.mrf.mxu1  ;;  %v5404_v23 = vld [vmem:[#allocation5 + $0x7a0] ss:$48 sps:$4 sm:$0xff]  }
 0x26b   :  { %4302 = vst [vmem:[#allocation8] sm:$0xff] %v3804_v30  ;;  %v3806_v36 = vadd.f32 %v3805_v28, %v3765_v31  ;;  %v5412_v28 = vld [vmem:[#allocation5 + $0x744] ss:$48 sps:$4 sm:$0xff]   ;;  %v5415_v30 = vld [vmem:[#allocation5 + $0x74c] ss:$48 sps:$4 sm:$0xff]  }
 0x26c   :  { %v3767_v39 = vpop.f32.mrf.mxu0  ;;  %v3808_v40 = vpop.f32.mrf.mxu1  ;;  %v5410_v31 = vld [vmem:[#allocation5 + $0x740] ss:$48 sps:$4 sm:$0xff]   ;;  %v5413_v34 = vld [vmem:[#allocation5 + $0x748] ss:$48 sps:$4 sm:$0xff]   ;;  %v5418_v35 = vld [vmem:[#allocation5 + $0x6e4] ss:$48 sps:$4 sm:$0xff]  }
 0x26d   :  { %4303 = vst [vmem:[#allocation8 + $0x8] sm:$0xff] %v3806_v36  ;;  %v5421_v36 = vld [vmem:[#allocation5 + $0x6ec] ss:$48 sps:$4 sm:$0xff]   ;;  %v5424_v39 = vld [vmem:[#allocation5 + $0x684] ss:$48 sps:$4 sm:$0xff]  }
 0x26e   :  { %v5427_v40 = vld [vmem:[#allocation5 + $0x68c] ss:$48 sps:$4 sm:$0xff]  }
 0x26f   :  { %3911 = vmatpush2.bf16.xpose.msra.mxu0 %v5344_v37  ;;  %3952 = vmatpush2.bf16.xpose.msra.mxu1 %v5347_v38  ;;  %v5416_v37 = vld [vmem:[#allocation5 + $0x6e0] ss:$48 sps:$4 sm:$0xff]   ;;  %v5419_v38 = vld [vmem:[#allocation5 + $0x6e8] ss:$48 sps:$4 sm:$0xff]  }
 0x270   :  { %3912 = vmatprep.subr.bf16.mxu0 %v5352_v41  ;;  %3953 = vmatprep.subr.bf16.mxu1 %v5355_v42  ;;  %v5422_v41 = vld [vmem:[#allocation5 + $0x680] ss:$48 sps:$4 sm:$0xff]   ;;  %v5425_v42 = vld [vmem:[#allocation5 + $0x688] ss:$48 sps:$4 sm:$0xff]  }
 0x277   :  { %3913 = vmatpush2.bf16.xpose.msra.mxu0 %v5350_v54  ;;  %3954 = vmatpush2.bf16.xpose.msra.mxu1 %v5353_v43  ;;  %v5430_v54 = vld [vmem:[#allocation5 + $0x624] ss:$48 sps:$4 sm:$0xff]   ;;  %v5433_v43 = vld [vmem:[#allocation5 + $0x62c] ss:$48 sps:$4 sm:$0xff]  }
 0x278   :  { %3914 = vmatprep.subr.bf16.mxu0 %v5358_v44  ;;  %3955 = vmatprep.subr.bf16.mxu1 %v5361_v45  ;;  %v5428_v44 = vld [vmem:[#allocation5 + $0x620] ss:$48 sps:$4 sm:$0xff]   ;;  %v5431_v45 = vld [vmem:[#allocation5 + $0x628] ss:$48 sps:$4 sm:$0xff]  }
 0x27f   :  { %3915 = vmatpush2.bf16.xpose.msra.mxu0 %v5356_v58  ;;  %3956 = vmatpush2.bf16.xpose.msra.mxu1 %v5359_v46  ;;  %v5436_v58 = vld [vmem:[#allocation5 + $0xbc4] ss:$48 sps:$4 sm:$0xff]   ;;  %v5439_v46 = vld [vmem:[#allocation5 + $0xbcc] ss:$48 sps:$4 sm:$0xff]  }
 0x280   :  { %3916 = vmatprep.subr.bf16.mxu0 %v5364_v47  ;;  %3957 = vmatprep.subr.bf16.mxu1 %v5367_v48  ;;  %v664_v47 = vsub.s32 2, %v5922_v61  ;;  %v668_v48 = vsub.s32 3, %v5922_v61 }
 0x287   :  { %3917 = vmatpush2.bf16.xpose.msra.mxu0 %v5362_v49  ;;  %3958 = vmatpush2.bf16.xpose.msra.mxu1 %v5365_v50  ;;  %v665_v49 = vrot.slane %v5925_v1, %v664_v47  ;;  %v5434_v50 = vld [vmem:[#allocation5 + $0xbc0] ss:$48 sps:$4 sm:$0xff]   ;;  %v5493_v47 = vld [vmem:[#allocation5 + $0xe4c] ss:$48 sps:$4 sm:$0xff]  }
 0x288   :  { %3918 = vmatprep.subr.bf16.mxu0 %v5370_v51  ;;  %3959 = vmatprep.subr.bf16.mxu1 %v5373_v52  ;;  %v5437_v51 = vld [vmem:[#allocation5 + $0xbc8] ss:$48 sps:$4 sm:$0xff]   ;;  %v5442_v52 = vld [vmem:[#allocation5 + $0xb64] ss:$48 sps:$4 sm:$0xff]  }
 0x28f   :  { %3919 = vmatpush2.bf16.xpose.msra.mxu0 %v5368_v53  ;;  %3960 = vmatpush2.bf16.xpose.msra.mxu1 %v5371_v55  ;;  %v5445_v53 = vld [vmem:[#allocation5 + $0xb6c] ss:$48 sps:$4 sm:$0xff]   ;;  %v669_v55 = vrot.slane %v5925_v1, %v668_v48  ;;  %v5488_v48 = vld [vmem:[#allocation5 + $0xe40] ss:$48 sps:$4 sm:$0xff]  }
 0x290   :  { %3920 = vmatprep.subr.bf16.mxu0 %v5376_v56  ;;  %3961 = vmatprep.subr.bf16.mxu1 %v5379_v57 }
 0x297   :  { %3921 = vmatpush2.bf16.xpose.msra.mxu0 %v5374_v59  ;;  %3962 = vmatpush2.bf16.xpose.msra.mxu1 %v5377_v60 }
 0x298   :  { %3922 = vmatprep.subr.bf16.mxu0 %v5382_v0  ;;  %3963 = vmatprep.subr.bf16.mxu1 %v5385_v2 }
 0x29f   :  { %3923 = vmatpush2.bf16.xpose.msra.mxu0 %v5380_v3  ;;  %3964 = vmatpush2.bf16.xpose.msra.mxu1 %v5383_v18 }
 0x2a0   :  { %3974 = vmatprep.subr.bf16.mxu0 %v5388_v4  ;;  %4015 = vmatprep.subr.bf16.mxu1 %v5391_v5 }
 0x2a6   :  { %3925 = vmatmul.mubr.bf16.vlgmr.msra.gmra.mxu0 %v5910_v25  ;;  %3966 = vmatmul.mubr.bf16.vlgmr.msra.gmra.mxu1 %v5912_v26 }
 0x2a7   :  { %3975 = vmatpush1.bf16.xpose.msra.mxu0 %v5386_v6  ;;  %4016 = vmatpush1.bf16.xpose.msra.mxu1 %v5389_v7  ;;  %v5440_v6 = vld [vmem:[#allocation5 + $0xb60] ss:$48 sps:$4 sm:$0xff]   ;;  %v5443_v7 = vld [vmem:[#allocation5 + $0xb68] ss:$48 sps:$4 sm:$0xff]  }
 0x2a8   :  { %3976 = vmatprep.subr.bf16.mxu0 %v5394_v22  ;;  %4017 = vmatprep.subr.bf16.mxu1 %v5397_v8  ;;  %v5448_v8 = vld [vmem:[#allocation5 + $0xb04] ss:$48 sps:$4 sm:$0xff]  }
 0x2a9   :  { %4006 = vmatprep.mubr.bf16.mxu0 %v5914_v32  ;;  %4047 = vmatprep.mubr.bf16.mxu1 %v5916_v33 }
 0x2af   :  { %3977 = vmatpush1.bf16.xpose.msra.mxu0 %v5392_v9  ;;  %4018 = vmatpush1.bf16.xpose.msra.mxu1 %v5395_v10  ;;  %v5451_v9 = vld [vmem:[#allocation5 + $0xb0c] ss:$48 sps:$4 sm:$0xff]   ;;  %v5446_v10 = vld [vmem:[#allocation5 + $0xb00] ss:$48 sps:$4 sm:$0xff]  }
 0x2b0   :  { %3978 = vmatprep.subr.bf16.mxu0 %v5400_v13  ;;  %4019 = vmatprep.subr.bf16.mxu1 %v5403_v14  ;;  %v5449_v13 = vld [vmem:[#allocation5 + $0xb08] ss:$48 sps:$4 sm:$0xff]   ;;  %v5454_v14 = vld [vmem:[#allocation5 + $0xaa4] ss:$48 sps:$4 sm:$0xff]  }
 0x2b7   :  { %3979 = vmatpush1.bf16.xpose.msra.mxu0 %v5398_v15  ;;  %4020 = vmatpush1.bf16.xpose.msra.mxu1 %v5401_v19  ;;  %v5457_v15 = vld [vmem:[#allocation5 + $0xaac] ss:$48 sps:$4 sm:$0xff]   ;;  %v5452_v19 = vld [vmem:[#allocation5 + $0xaa0] ss:$48 sps:$4 sm:$0xff]  }
 0x2b8   :  { %3980 = vmatprep.subr.bf16.mxu0 %v5406_v20  ;;  %4021 = vmatprep.subr.bf16.mxu1 %v5409_v21  ;;  %v5455_v20 = vld [vmem:[#allocation5 + $0xaa8] ss:$48 sps:$4 sm:$0xff]   ;;  %v5460_v21 = vld [vmem:[#allocation5 + $0xa44] ss:$48 sps:$4 sm:$0xff]  }
 0x2bf   :  { %3981 = vmatpush1.bf16.xpose.msra.mxu0 %v5404_v23  ;;  %4022 = vmatpush1.bf16.xpose.msra.mxu1 %v5407_v24  ;;  %v5463_v23 = vld [vmem:[#allocation5 + $0xa4c] ss:$48 sps:$4 sm:$0xff]   ;;  %v5458_v24 = vld [vmem:[#allocation5 + $0xa40] ss:$48 sps:$4 sm:$0xff]  }
 0x2c0   :  { %3982 = vmatprep.subr.bf16.mxu0 %v5412_v28  ;;  %4023 = vmatprep.subr.bf16.mxu1 %v5415_v30  ;;  %v5461_v28 = vld [vmem:[#allocation5 + $0xa48] ss:$48 sps:$4 sm:$0xff]   ;;  %v5466_v30 = vld [vmem:[#allocation5 + $0x9e4] ss:$48 sps:$4 sm:$0xff]  }
 0x2c7   :  { %3983 = vmatpush1.bf16.xpose.msra.mxu0 %v5410_v31  ;;  %4024 = vmatpush1.bf16.xpose.msra.mxu1 %v5413_v34  ;;  %v5469_v31 = vld [vmem:[#allocation5 + $0x9ec] ss:$48 sps:$4 sm:$0xff]   ;;  %v5464_v34 = vld [vmem:[#allocation5 + $0x9e0] ss:$48 sps:$4 sm:$0xff]  }
 0x2c8   :  { %3984 = vmatprep.subr.bf16.mxu0 %v5418_v35  ;;  %4025 = vmatprep.subr.bf16.mxu1 %v5421_v36  ;;  %v5467_v35 = vld [vmem:[#allocation5 + $0x9e8] ss:$48 sps:$4 sm:$0xff]   ;;  %v5472_v36 = vld [vmem:[#allocation5 + $0x984] ss:$48 sps:$4 sm:$0xff]  }
 0x2cf   :  { %3985 = vmatpush1.bf16.xpose.msra.mxu0 %v5416_v37  ;;  %4026 = vmatpush1.bf16.xpose.msra.mxu1 %v5419_v38  ;;  %v5475_v37 = vld [vmem:[#allocation5 + $0x98c] ss:$48 sps:$4 sm:$0xff]   ;;  %v5470_v38 = vld [vmem:[#allocation5 + $0x980] ss:$48 sps:$4 sm:$0xff]  }
 0x2d0   :  { %3986 = vmatprep.subr.bf16.mxu0 %v5424_v39  ;;  %4027 = vmatprep.subr.bf16.mxu1 %v5427_v40  ;;  %v5473_v39 = vld [vmem:[#allocation5 + $0x988] ss:$48 sps:$4 sm:$0xff]   ;;  %v5478_v40 = vld [vmem:[#allocation5 + $0x924] ss:$48 sps:$4 sm:$0xff]  }
 0x2d7   :  { %3987 = vmatpush1.bf16.xpose.msra.mxu0 %v5422_v41  ;;  %4028 = vmatpush1.bf16.xpose.msra.mxu1 %v5425_v42  ;;  %v5481_v41 = vld [vmem:[#allocation5 + $0x92c] ss:$48 sps:$4 sm:$0xff]   ;;  %v5476_v42 = vld [vmem:[#allocation5 + $0x920] ss:$48 sps:$4 sm:$0xff]  }
 0x2d8   :  { %3988 = vmatprep.subr.bf16.mxu0 %v5430_v54  ;;  %4029 = vmatprep.subr.bf16.mxu1 %v5433_v43  ;;  %v5479_v54 = vld [vmem:[#allocation5 + $0x928] ss:$48 sps:$4 sm:$0xff]   ;;  %v5484_v43 = vld [vmem:[#allocation5 + $0xea4] ss:$48 sps:$4 sm:$0xff]  }
 0x2df   :  { %3989 = vmatpush1.bf16.xpose.msra.mxu0 %v5428_v44  ;;  %4030 = vmatpush1.bf16.xpose.msra.mxu1 %v5431_v45  ;;  %v5487_v44 = vld [vmem:[#allocation5 + $0xeac] ss:$48 sps:$4 sm:$0xff]   ;;  %v5482_v45 = vld [vmem:[#allocation5 + $0xea0] ss:$48 sps:$4 sm:$0xff]  }
 0x2e0   :  { %3990 = vmatprep.subr.bf16.mxu0 %v5436_v58  ;;  %4031 = vmatprep.subr.bf16.mxu1 %v5439_v46  ;;  %v5485_v58 = vld [vmem:[#allocation5 + $0xea8] ss:$48 sps:$4 sm:$0xff]   ;;  %v5490_v46 = vld [vmem:[#allocation5 + $0xe44] ss:$48 sps:$4 sm:$0xff]  }
 0x2e6   :  { %v3844_v56 = vpop.f32.mrf.mxu0  ;;  %v3885_v57 = vpop.f32.mrf.mxu1 }
 0x2e7   :  { %v3845_v59 = vadd.f32 %v3844_v56, %v665_v49  ;;  %3991 = vmatpush2.bf16.xpose.msra.mxu0 %v5434_v50  ;;  %4032 = vmatpush2.bf16.xpose.msra.mxu1 %v5437_v51  ;;  %v5491_v49 = vld [vmem:[#allocation5 + $0xe48] ss:$48 sps:$4 sm:$0xff]   ;;  %v5496_v50 = vld [vmem:[#allocation5 + $0xde4] ss:$48 sps:$4 sm:$0xff]   ;;  %v5499_v51 = vld [vmem:[#allocation5 + $0xdec] ss:$48 sps:$4 sm:$0xff]  }
 0x2e8   :  { %v3846_v60 = vpop.f32.mrf.mxu0  ;;  %v3887_v0 = vpop.f32.mrf.mxu1  ;;  %3992 = vmatprep.subr.bf16.mxu0 %v5442_v52  ;;  %4033 = vmatprep.subr.bf16.mxu1 %v5445_v53  ;;  %v5494_v52 = vld [vmem:[#allocation5 + $0xde0] ss:$48 sps:$4 sm:$0xff]   ;;  %v5497_v53 = vld [vmem:[#allocation5 + $0xde8] ss:$48 sps:$4 sm:$0xff]   ;;  %v5505_v56 = vld [vmem:[#allocation5 + $0xd8c] ss:$48 sps:$4 sm:$0xff]  }
 0x2e9   :  { %v5962_v2 = vadd.f32 %v3885_v57, %v3845_v59  ;;  %v3847_v3 = vadd.f32 %v3846_v60, %v669_v55  ;;  %v5502_v55 = vld [vmem:[#allocation5 + $0xd84] ss:$48 sps:$4 sm:$0xff]   ;;  %v5500_v57 = vld [vmem:[#allocation5 + $0xd80] ss:$48 sps:$4 sm:$0xff]  }
 0x2ea   :  { %v3848_v18 = vpop.f32.mrf.mxu0  ;;  %v3889_v4 = vpop.f32.mrf.mxu1  ;;  %v5508_v59 = vld [vmem:[#allocation5 + $0xd24] ss:$48 sps:$4 sm:$0xff]   ;;  %v5506_v60 = vld [vmem:[#allocation5 + $0xd20] ss:$48 sps:$4 sm:$0xff]  }
 0x2eb   :  { %v5964_v5 = vadd.f32 %v3887_v0, %v3847_v3  ;;  %v5509_v0 = vld [vmem:[#allocation5 + $0xd28] ss:$48 sps:$4 sm:$0xff]   ;;  %v5514_v3 = vld [vmem:[#allocation5 + $0xcc4] ss:$48 sps:$4 sm:$0xff]   ;;  %v5517_v18 = vld [vmem:[#allocation5 + $0xccc] ss:$48 sps:$4 sm:$0xff]  }
 0x2ec   :  { %v3849_v22 = vpop.f32.mrf.mxu0  ;;  %v3890_v1 = vpop.f32.mrf.mxu1  ;;  %v5512_v4 = vld [vmem:[#allocation5 + $0xcc0] ss:$48 sps:$4 sm:$0xff]  }
 0x2ed   :  { %v5523_v22 = vld [vmem:[#allocation5 + $0xc6c] ss:$48 sps:$4 sm:$0xff]   ;;  %v5518_v1 = vld [vmem:[#allocation5 + $0xc60] ss:$48 sps:$4 sm:$0xff]  }
 0x2ef   :  { %3993 = vmatpush2.bf16.xpose.msra.mxu0 %v5440_v6  ;;  %4034 = vmatpush2.bf16.xpose.msra.mxu1 %v5443_v7  ;;  %v5515_v6 = vld [vmem:[#allocation5 + $0xcc8] ss:$48 sps:$4 sm:$0xff]   ;;  %v5520_v7 = vld [vmem:[#allocation5 + $0xc64] ss:$48 sps:$4 sm:$0xff]  }
 0x2f0   :  { %3994 = vmatprep.subr.bf16.mxu0 %v5448_v8  ;;  %4035 = vmatprep.subr.bf16.mxu1 %v5451_v9  ;;  %v5521_v8 = vld [vmem:[#allocation5 + $0xc68] ss:$48 sps:$4 sm:$0xff]   ;;  %v5526_v9 = vld [vmem:[#allocation5 + $0xc04] ss:$48 sps:$4 sm:$0xff]  }
 0x2f7   :  { %3995 = vmatpush2.bf16.xpose.msra.mxu0 %v5446_v10  ;;  %4036 = vmatpush2.bf16.xpose.msra.mxu1 %v5449_v13  ;;  %v5529_v10 = vld [vmem:[#allocation5 + $0xc0c] ss:$48 sps:$4 sm:$0xff]   ;;  %v5524_v13 = vld [vmem:[#allocation5 + $0xc00] ss:$48 sps:$4 sm:$0xff]  }
 0x2f8   :  { %3996 = vmatprep.subr.bf16.mxu0 %v5454_v14  ;;  %4037 = vmatprep.subr.bf16.mxu1 %v5457_v15  ;;  %v5527_v14 = vld [vmem:[#allocation5 + $0xc08] ss:$48 sps:$4 sm:$0xff]   ;;  %v5532_v15 = vld [vmem:[#allocation5 + $0x11a4] ss:$48 sps:$4 sm:$0xff]  }
 0x2ff   :  { %3997 = vmatpush2.bf16.xpose.msra.mxu0 %v5452_v19  ;;  %4038 = vmatpush2.bf16.xpose.msra.mxu1 %v5455_v20  ;;  %v5535_v19 = vld [vmem:[#allocation5 + $0x11ac] ss:$48 sps:$4 sm:$0xff]   ;;  %v5530_v20 = vld [vmem:[#allocation5 + $0x11a0] ss:$48 sps:$4 sm:$0xff]  }
 0x300   :  { %3998 = vmatprep.subr.bf16.mxu0 %v5460_v21  ;;  %4039 = vmatprep.subr.bf16.mxu1 %v5463_v23  ;;  %v5533_v21 = vld [vmem:[#allocation5 + $0x11a8] ss:$48 sps:$4 sm:$0xff]   ;;  %v5538_v23 = vld [vmem:[#allocation5 + $0x1144] ss:$48 sps:$4 sm:$0xff]  }
 0x307   :  { %3999 = vmatpush2.bf16.xpose.msra.mxu0 %v5458_v24  ;;  %4040 = vmatpush2.bf16.xpose.msra.mxu1 %v5461_v28  ;;  %v5541_v24 = vld [vmem:[#allocation5 + $0x114c] ss:$48 sps:$4 sm:$0xff]  }
 0x308   :  { %4000 = vmatprep.subr.bf16.mxu0 %v5466_v30  ;;  %4041 = vmatprep.subr.bf16.mxu1 %v5469_v31 }
 0x30f   :  { %4001 = vmatpush2.bf16.xpose.msra.mxu0 %v5464_v34  ;;  %4042 = vmatpush2.bf16.xpose.msra.mxu1 %v5467_v35 }
 0x310   :  { %4002 = vmatprep.subr.bf16.mxu0 %v5472_v36  ;;  %4043 = vmatprep.subr.bf16.mxu1 %v5475_v37 }
 0x317   :  { %4003 = vmatpush2.bf16.xpose.msra.mxu0 %v5470_v38  ;;  %4044 = vmatpush2.bf16.xpose.msra.mxu1 %v5473_v39 }
 0x318   :  { %4004 = vmatprep.subr.bf16.mxu0 %v5478_v40  ;;  %4045 = vmatprep.subr.bf16.mxu1 %v5481_v41  ;;  %v5536_v41 = vld [vmem:[#allocation5 + $0x1140] ss:$48 sps:$4 sm:$0xff]  }
 0x31f   :  { %4005 = vmatpush2.bf16.xpose.msra.mxu0 %v5476_v42  ;;  %4046 = vmatpush2.bf16.xpose.msra.mxu1 %v5479_v54  ;;  %v5539_v42 = vld [vmem:[#allocation5 + $0x1148] ss:$48 sps:$4 sm:$0xff]  }
 0x320   :  { %4056 = vmatprep.subr.bf16.mxu0 %v5484_v43  ;;  %4097 = vmatprep.subr.bf16.mxu1 %v5487_v44  ;;  %v5544_v44 = vld [vmem:[#allocation5 + $0x10e4] ss:$48 sps:$4 sm:$0xff]  }
 0x326   :  { %4007 = vmatmul.mubr.bf16.vlgmr.msra.gmra.mxu0 %v5934_v62  ;;  %4048 = vmatmul.mubr.bf16.vlgmr.msra.gmra.mxu1 %v5936_v63 }
 0x327   :  { %4057 = vmatpush1.bf16.xpose.msra.mxu0 %v5482_v45  ;;  %4098 = vmatpush1.bf16.xpose.msra.mxu1 %v5485_v58  ;;  %v5542_v45 = vld [vmem:[#allocation5 + $0x10e0] ss:$48 sps:$4 sm:$0xff]   ;;  %v5545_v58 = vld [vmem:[#allocation5 + $0x10e8] ss:$48 sps:$4 sm:$0xff]  }
 0x328   :  { %4058 = vmatprep.subr.bf16.mxu0 %v5490_v46  ;;  %4099 = vmatprep.subr.bf16.mxu1 %v5493_v47  ;;  %v5550_v46 = vld [vmem:[#allocation5 + $0x1084] ss:$48 sps:$4 sm:$0xff]   ;;  %v5553_v47 = vld [vmem:[#allocation5 + $0x108c] ss:$48 sps:$4 sm:$0xff]  }
 0x329   :  { %4088 = vmatprep.mubr.bf16.mxu0 %v5892_v27  ;;  %4129 = vmatprep.mubr.bf16.mxu1 %v5894_v29  ;;  %v5503_v27 = vld [vmem:[#allocation5 + $0xd88] ss:$48 sps:$4 sm:$0xff]   ;;  %v5511_v29 = vld [vmem:[#allocation5 + $0xd2c] ss:$48 sps:$4 sm:$0xff]  }
 0x32f   :  { %4059 = vmatpush1.bf16.xpose.msra.mxu0 %v5488_v48  ;;  %4100 = vmatpush1.bf16.xpose.msra.mxu1 %v5491_v49  ;;  %v5551_v48 = vld [vmem:[#allocation5 + $0x1088] ss:$48 sps:$4 sm:$0xff]   ;;  %v5556_v49 = vld [vmem:[#allocation5 + $0x1024] ss:$48 sps:$4 sm:$0xff]  }
 0x330   :  { %4060 = vmatprep.subr.bf16.mxu0 %v5496_v50  ;;  %4101 = vmatprep.subr.bf16.mxu1 %v5499_v51  ;;  %v5559_v50 = vld [vmem:[#allocation5 + $0x102c] ss:$48 sps:$4 sm:$0xff]   ;;  %v5554_v51 = vld [vmem:[#allocation5 + $0x1020] ss:$48 sps:$4 sm:$0xff]  }
 0x337   :  { %4061 = vmatpush1.bf16.xpose.msra.mxu0 %v5494_v52  ;;  %4102 = vmatpush1.bf16.xpose.msra.mxu1 %v5497_v53  ;;  %v5557_v52 = vld [vmem:[#allocation5 + $0x1028] ss:$48 sps:$4 sm:$0xff]   ;;  %v5562_v53 = vld [vmem:[#allocation5 + $0xfc4] ss:$48 sps:$4 sm:$0xff]  }
 0x338   :  { %4062 = vmatprep.subr.bf16.mxu0 %v5502_v55  ;;  %4103 = vmatprep.subr.bf16.mxu1 %v5505_v56  ;;  %v5565_v55 = vld [vmem:[#allocation5 + $0xfcc] ss:$48 sps:$4 sm:$0xff]   ;;  %v5560_v56 = vld [vmem:[#allocation5 + $0xfc0] ss:$48 sps:$4 sm:$0xff]  }
 0x33f   :  { %4063 = vmatpush1.bf16.xpose.msra.mxu0 %v5500_v57  ;;  %4104 = vmatpush1.bf16.xpose.msra.mxu1 %v5503_v27  ;;  %v5563_v57 = vld [vmem:[#allocation5 + $0xfc8] ss:$48 sps:$4 sm:$0xff]   ;;  %v5568_v27 = vld [vmem:[#allocation5 + $0xf64] ss:$48 sps:$4 sm:$0xff]  }
 0x340   :  { %4064 = vmatprep.subr.bf16.mxu0 %v5508_v59  ;;  %4105 = vmatprep.subr.bf16.mxu1 %v5511_v29  ;;  %v5571_v59 = vld [vmem:[#allocation5 + $0xf6c] ss:$48 sps:$4 sm:$0xff]   ;;  %v5566_v29 = vld [vmem:[#allocation5 + $0xf60] ss:$48 sps:$4 sm:$0xff]  }
 0x347   :  { %4065 = vmatpush1.bf16.xpose.msra.mxu0 %v5506_v60  ;;  %4106 = vmatpush1.bf16.xpose.msra.mxu1 %v5509_v0  ;;  %v5569_v60 = vld [vmem:[#allocation5 + $0xf68] ss:$48 sps:$4 sm:$0xff]   ;;  %v5574_v0 = vld [vmem:[#allocation5 + $0xf04] ss:$48 sps:$4 sm:$0xff]  }
 0x348   :  { %4066 = vmatprep.subr.bf16.mxu0 %v5514_v3  ;;  %4107 = vmatprep.subr.bf16.mxu1 %v5517_v18  ;;  %v5577_v3 = vld [vmem:[#allocation5 + $0xf0c] ss:$48 sps:$4 sm:$0xff]   ;;  %v5572_v18 = vld [vmem:[#allocation5 + $0xf00] ss:$48 sps:$4 sm:$0xff]  }
 0x34f   :  { %4067 = vmatpush1.bf16.xpose.msra.mxu0 %v5512_v4  ;;  %4108 = vmatpush1.bf16.xpose.msra.mxu1 %v5515_v6  ;;  %v5575_v4 = vld [vmem:[#allocation5 + $0xf08] ss:$48 sps:$4 sm:$0xff]   ;;  %v5580_v6 = vld [vmem:[#allocation5 + $0xeb4] ss:$48 sps:$4 sm:$0xff]  }
 0x350   :  { %4068 = vmatprep.subr.bf16.mxu0 %v5520_v7  ;;  %4109 = vmatprep.subr.bf16.mxu1 %v5523_v22  ;;  %v5583_v7 = vld [vmem:[#allocation5 + $0xebc] ss:$48 sps:$4 sm:$0xff]   ;;  %v5578_v22 = vld [vmem:[#allocation5 + $0xeb0] ss:$48 sps:$4 sm:$0xff]  }
 0x357   :  { %4069 = vmatpush1.bf16.xpose.msra.mxu0 %v5518_v1  ;;  %4110 = vmatpush1.bf16.xpose.msra.mxu1 %v5521_v8  ;;  %v5581_v1 = vld [vmem:[#allocation5 + $0xeb8] ss:$48 sps:$4 sm:$0xff]   ;;  %v5586_v8 = vld [vmem:[#allocation5 + $0xe54] ss:$48 sps:$4 sm:$0xff]  }
 0x358   :  { %4070 = vmatprep.subr.bf16.mxu0 %v5526_v9  ;;  %4111 = vmatprep.subr.bf16.mxu1 %v5529_v10  ;;  %v5589_v9 = vld [vmem:[#allocation5 + $0xe5c] ss:$48 sps:$4 sm:$0xff]   ;;  %v5584_v10 = vld [vmem:[#allocation5 + $0xe50] ss:$48 sps:$4 sm:$0xff]  }
 0x35f   :  { %4071 = vmatpush1.bf16.xpose.msra.mxu0 %v5524_v13  ;;  %4112 = vmatpush1.bf16.xpose.msra.mxu1 %v5527_v14  ;;  %v5587_v13 = vld [vmem:[#allocation5 + $0xe58] ss:$48 sps:$4 sm:$0xff]   ;;  %v5592_v14 = vld [vmem:[#allocation5 + $0xdf4] ss:$48 sps:$4 sm:$0xff]  }
 0x360   :  { %4072 = vmatprep.subr.bf16.mxu0 %v5532_v15  ;;  %4113 = vmatprep.subr.bf16.mxu1 %v5535_v19  ;;  %v5595_v15 = vld [vmem:[#allocation5 + $0xdfc] ss:$48 sps:$4 sm:$0xff]   ;;  %v5590_v19 = vld [vmem:[#allocation5 + $0xdf0] ss:$48 sps:$4 sm:$0xff]  }
 0x366   :  { %v3926_v28 = vpop.f32.mrf.mxu0  ;;  %v3967_v30 = vpop.f32.mrf.mxu1 }
 0x367   :  { %v3927_v31 = vadd.f32 %v3926_v28, %v5962_v2  ;;  %4073 = vmatpush2.bf16.xpose.msra.mxu0 %v5530_v20  ;;  %4114 = vmatpush2.bf16.xpose.msra.mxu1 %v5533_v21  ;;  %v5547_v2 = vld [vmem:[#allocation5 + $0x10ec] ss:$48 sps:$4 sm:$0xff]   ;;  %v5598_v20 = vld [vmem:[#allocation5 + $0xd94] ss:$48 sps:$4 sm:$0xff]   ;;  %v5596_v21 = vld [vmem:[#allocation5 + $0xd90] ss:$48 sps:$4 sm:$0xff]  }
 0x368   :  { %v3928_v34 = vpop.f32.mrf.mxu0  ;;  %v3969_v35 = vpop.f32.mrf.mxu1  ;;  %4074 = vmatprep.subr.bf16.mxu0 %v5538_v23  ;;  %4115 = vmatprep.subr.bf16.mxu1 %v5541_v24  ;;  %v5604_v23 = vld [vmem:[#allocation5 + $0xd34] ss:$48 sps:$4 sm:$0xff]   ;;  %v5602_v24 = vld [vmem:[#allocation5 + $0xd30] ss:$48 sps:$4 sm:$0xff]   ;;  %v5605_v28 = vld [vmem:[#allocation5 + $0xd38] ss:$48 sps:$4 sm:$0xff]  }
 0x369   :  { %v5971_v36 = vadd.f32 %v3967_v30, %v3927_v31  ;;  %v3929_v37 = vadd.f32 %v3928_v34, %v5964_v5  ;;  %v5548_v5 = vld [vmem:[#allocation5 + $0x1080] ss:$48 sps:$4 sm:$0xff]   ;;  %v5610_v30 = vld [vmem:[#allocation5 + $0xcd4] ss:$48 sps:$4 sm:$0xff]   ;;  %v5613_v31 = vld [vmem:[#allocation5 + $0xcdc] ss:$48 sps:$4 sm:$0xff]  }
 0x36a   :  { %v3930_v38 = vpop.f32.mrf.mxu0  ;;  %v3971_v39 = vpop.f32.mrf.mxu1  ;;  %v5608_v34 = vld [vmem:[#allocation5 + $0xcd0] ss:$48 sps:$4 sm:$0xff]  }
 0x36b   :  { %v5974_v40 = vadd.f32 %v3969_v35, %v3929_v37  ;;  %v5611_v35 = vld [vmem:[#allocation5 + $0xcd8] ss:$48 sps:$4 sm:$0xff]   ;;  %v5616_v37 = vld [vmem:[#allocation5 + $0xc74] ss:$48 sps:$4 sm:$0xff]   ;;  %v5619_v38 = vld [vmem:[#allocation5 + $0xc7c] ss:$48 sps:$4 sm:$0xff]  }
 0x36c   :  { %v3931_v54 = vpop.f32.mrf.mxu0  ;;  %v3972_v43 = vpop.f32.mrf.mxu1  ;;  %v5614_v39 = vld [vmem:[#allocation5 + $0xc70] ss:$48 sps:$4 sm:$0xff]  }
 0x36d   :  { %v5625_v54 = vld [vmem:[#allocation5 + $0xc1c] ss:$48 sps:$4 sm:$0xff]   ;;  %v5620_v43 = vld [vmem:[#allocation5 + $0xc10] ss:$48 sps:$4 sm:$0xff]  }
 0x36f   :  { %4075 = vmatpush2.bf16.xpose.msra.mxu0 %v5536_v41  ;;  %4116 = vmatpush2.bf16.xpose.msra.mxu1 %v5539_v42  ;;  %v5617_v41 = vld [vmem:[#allocation5 + $0xc78] ss:$48 sps:$4 sm:$0xff]   ;;  %v5622_v42 = vld [vmem:[#allocation5 + $0xc14] ss:$48 sps:$4 sm:$0xff]  }
 0x370   :  { %4076 = vmatprep.subr.bf16.mxu0 %v5544_v44  ;;  %4117 = vmatprep.subr.bf16.mxu1 %v5547_v2  ;;  %v5623_v44 = vld [vmem:[#allocation5 + $0xc18] ss:$48 sps:$4 sm:$0xff]   ;;  %v5628_v2 = vld [vmem:[#allocation5 + $0x11b4] ss:$48 sps:$4 sm:$0xff]  }
 0x377   :  { %4077 = vmatpush2.bf16.xpose.msra.mxu0 %v5542_v45  ;;  %4118 = vmatpush2.bf16.xpose.msra.mxu1 %v5545_v58  ;;  %v5631_v45 = vld [vmem:[#allocation5 + $0x11bc] ss:$48 sps:$4 sm:$0xff]   ;;  %v5626_v58 = vld [vmem:[#allocation5 + $0x11b0] ss:$48 sps:$4 sm:$0xff]  }
 0x378   :  { %4078 = vmatprep.subr.bf16.mxu0 %v5550_v46  ;;  %4119 = vmatprep.subr.bf16.mxu1 %v5553_v47  ;;  %v5629_v46 = vld [vmem:[#allocation5 + $0x11b8] ss:$48 sps:$4 sm:$0xff]   ;;  %v5634_v47 = vld [vmem:[#allocation5 + $0x1154] ss:$48 sps:$4 sm:$0xff]  }
 0x37f   :  { %4079 = vmatpush2.bf16.xpose.msra.mxu0 %v5548_v5  ;;  %4120 = vmatpush2.bf16.xpose.msra.mxu1 %v5551_v48  ;;  %v5637_v5 = vld [vmem:[#allocation5 + $0x115c] ss:$48 sps:$4 sm:$0xff]  }
 0x380   :  { %4080 = vmatprep.subr.bf16.mxu0 %v5556_v49  ;;  %4121 = vmatprep.subr.bf16.mxu1 %v5559_v50 }
 0x387   :  { %4081 = vmatpush2.bf16.xpose.msra.mxu0 %v5554_v51  ;;  %4122 = vmatpush2.bf16.xpose.msra.mxu1 %v5557_v52 }
 0x388   :  { %4082 = vmatprep.subr.bf16.mxu0 %v5562_v53  ;;  %4123 = vmatprep.subr.bf16.mxu1 %v5565_v55 }
 0x38f   :  { %4083 = vmatpush2.bf16.xpose.msra.mxu0 %v5560_v56  ;;  %4124 = vmatpush2.bf16.xpose.msra.mxu1 %v5563_v57 }
 0x390   :  { %4084 = vmatprep.subr.bf16.mxu0 %v5568_v27  ;;  %4125 = vmatprep.subr.bf16.mxu1 %v5571_v59  ;;  %v5632_v59 = vld [vmem:[#allocation5 + $0x1150] ss:$48 sps:$4 sm:$0xff]  }
 0x397   :  { %4085 = vmatpush2.bf16.xpose.msra.mxu0 %v5566_v29  ;;  %4126 = vmatpush2.bf16.xpose.msra.mxu1 %v5569_v60  ;;  %v5635_v29 = vld [vmem:[#allocation5 + $0x1158] ss:$48 sps:$4 sm:$0xff]  }
 0x398   :  { %4086 = vmatprep.subr.bf16.mxu0 %v5574_v0  ;;  %4127 = vmatprep.subr.bf16.mxu1 %v5577_v3  ;;  %v5640_v3 = vld [vmem:[#allocation5 + $0x10f4] ss:$48 sps:$4 sm:$0xff]  }
 0x39f   :  { %4087 = vmatpush2.bf16.xpose.msra.mxu0 %v5572_v18  ;;  %4128 = vmatpush2.bf16.xpose.msra.mxu1 %v5575_v4  ;;  %v5643_v18 = vld [vmem:[#allocation5 + $0x10fc] ss:$48 sps:$4 sm:$0xff]   ;;  %v5641_v4 = vld [vmem:[#allocation5 + $0x10f8] ss:$48 sps:$4 sm:$0xff]  }
 0x3a0   :  { %4138 = vmatprep.subr.bf16.mxu0 %v5580_v6  ;;  %4179 = vmatprep.subr.bf16.mxu1 %v5583_v7  ;;  %v5646_v6 = vld [vmem:[#allocation5 + $0x1094] ss:$48 sps:$4 sm:$0xff]   ;;  %v5649_v7 = vld [vmem:[#allocation5 + $0x109c] ss:$48 sps:$4 sm:$0xff]  }
 0x3a6   :  { %4089 = vmatmul.mubr.bf16.vlgmr.msra.gmra.mxu0 %v5898_v11  ;;  %4130 = vmatmul.mubr.bf16.vlgmr.msra.gmra.mxu1 %v5900_v12  ;;  %v5593_v11 = vld [vmem:[#allocation5 + $0xdf8] ss:$48 sps:$4 sm:$0xff]   ;;  %v5601_v12 = vld [vmem:[#allocation5 + $0xd9c] ss:$48 sps:$4 sm:$0xff]  }
 0x3a7   :  { %4139 = vmatpush1.bf16.xpose.msra.mxu0 %v5578_v22  ;;  %4180 = vmatpush1.bf16.xpose.msra.mxu1 %v5581_v1  ;;  %v5647_v22 = vld [vmem:[#allocation5 + $0x1098] ss:$48 sps:$4 sm:$0xff]   ;;  %v5652_v1 = vld [vmem:[#allocation5 + $0x1034] ss:$48 sps:$4 sm:$0xff]  }
 0x3a8   :  { %4140 = vmatprep.subr.bf16.mxu0 %v5586_v8  ;;  %4181 = vmatprep.subr.bf16.mxu1 %v5589_v9  ;;  %v5655_v8 = vld [vmem:[#allocation5 + $0x103c] ss:$48 sps:$4 sm:$0xff]   ;;  %v5650_v9 = vld [vmem:[#allocation5 + $0x1030] ss:$48 sps:$4 sm:$0xff]  }
 0x3a9   :  { %4170 = vmatprep.mubr.bf16.mxu0 %v5902_v16  ;;  %4211 = vmatprep.mubr.bf16.mxu1 %v5904_v17  ;;  %v5599_v16 = vld [vmem:[#allocation5 + $0xd98] ss:$48 sps:$4 sm:$0xff]   ;;  %v5607_v17 = vld [vmem:[#allocation5 + $0xd3c] ss:$48 sps:$4 sm:$0xff]  }
 0x3af   :  { %4141 = vmatpush1.bf16.xpose.msra.mxu0 %v5584_v10  ;;  %4182 = vmatpush1.bf16.xpose.msra.mxu1 %v5587_v13  ;;  %v5653_v10 = vld [vmem:[#allocation5 + $0x1038] ss:$48 sps:$4 sm:$0xff]   ;;  %v5658_v13 = vld [vmem:[#allocation5 + $0xfd4] ss:$48 sps:$4 sm:$0xff]  }
 0x3b0   :  { %4142 = vmatprep.subr.bf16.mxu0 %v5592_v14  ;;  %4183 = vmatprep.subr.bf16.mxu1 %v5595_v15  ;;  %v5661_v14 = vld [vmem:[#allocation5 + $0xfdc] ss:$48 sps:$4 sm:$0xff]   ;;  %v5656_v15 = vld [vmem:[#allocation5 + $0xfd0] ss:$48 sps:$4 sm:$0xff]  }
 0x3b7   :  { %4143 = vmatpush1.bf16.xpose.msra.mxu0 %v5590_v19  ;;  %4184 = vmatpush1.bf16.xpose.msra.mxu1 %v5593_v11  ;;  %v5659_v19 = vld [vmem:[#allocation5 + $0xfd8] ss:$48 sps:$4 sm:$0xff]   ;;  %v5664_v11 = vld [vmem:[#allocation5 + $0xf74] ss:$48 sps:$4 sm:$0xff]  }
 0x3b8   :  { %4144 = vmatprep.subr.bf16.mxu0 %v5598_v20  ;;  %4185 = vmatprep.subr.bf16.mxu1 %v5601_v12  ;;  %v5667_v20 = vld [vmem:[#allocation5 + $0xf7c] ss:$48 sps:$4 sm:$0xff]   ;;  %v5662_v12 = vld [vmem:[#allocation5 + $0xf70] ss:$48 sps:$4 sm:$0xff]  }
 0x3bf   :  { %4145 = vmatpush1.bf16.xpose.msra.mxu0 %v5596_v21  ;;  %4186 = vmatpush1.bf16.xpose.msra.mxu1 %v5599_v16  ;;  %v5665_v21 = vld [vmem:[#allocation5 + $0xf78] ss:$48 sps:$4 sm:$0xff]   ;;  %v5670_v16 = vld [vmem:[#allocation5 + $0xf14] ss:$48 sps:$4 sm:$0xff]  }
 0x3c0   :  { %4146 = vmatprep.subr.bf16.mxu0 %v5604_v23  ;;  %4187 = vmatprep.subr.bf16.mxu1 %v5607_v17  ;;  %v5673_v23 = vld [vmem:[#allocation5 + $0xf1c] ss:$48 sps:$4 sm:$0xff]   ;;  %v5668_v17 = vld [vmem:[#allocation5 + $0xf10] ss:$48 sps:$4 sm:$0xff]  }
 0x3c7   :  { %4147 = vmatpush1.bf16.xpose.msra.mxu0 %v5602_v24  ;;  %4188 = vmatpush1.bf16.xpose.msra.mxu1 %v5605_v28  ;;  %v5671_v24 = vld [vmem:[#allocation5 + $0xf18] ss:$48 sps:$4 sm:$0xff]   ;;  %v5676_v28 = vld [vmem:[#allocation5 + $0xec4] ss:$48 sps:$4 sm:$0xff]  }
 0x3c8   :  { %4148 = vmatprep.subr.bf16.mxu0 %v5610_v30  ;;  %4189 = vmatprep.subr.bf16.mxu1 %v5613_v31  ;;  %v5679_v30 = vld [vmem:[#allocation5 + $0xecc] ss:$48 sps:$4 sm:$0xff]   ;;  %v5674_v31 = vld [vmem:[#allocation5 + $0xec0] ss:$48 sps:$4 sm:$0xff]  }
 0x3cf   :  { %4149 = vmatpush1.bf16.xpose.msra.mxu0 %v5608_v34  ;;  %4190 = vmatpush1.bf16.xpose.msra.mxu1 %v5611_v35  ;;  %v5677_v34 = vld [vmem:[#allocation5 + $0xec8] ss:$48 sps:$4 sm:$0xff]   ;;  %v5682_v35 = vld [vmem:[#allocation5 + $0xe64] ss:$48 sps:$4 sm:$0xff]  }
 0x3d0   :  { %4150 = vmatprep.subr.bf16.mxu0 %v5616_v37  ;;  %4191 = vmatprep.subr.bf16.mxu1 %v5619_v38  ;;  %v5685_v37 = vld [vmem:[#allocation5 + $0xe6c] ss:$48 sps:$4 sm:$0xff]   ;;  %v5680_v38 = vld [vmem:[#allocation5 + $0xe60] ss:$48 sps:$4 sm:$0xff]  }
 0x3d7   :  { %4151 = vmatpush1.bf16.xpose.msra.mxu0 %v5614_v39  ;;  %4192 = vmatpush1.bf16.xpose.msra.mxu1 %v5617_v41  ;;  %v5683_v39 = vld [vmem:[#allocation5 + $0xe68] ss:$48 sps:$4 sm:$0xff]   ;;  %v5688_v41 = vld [vmem:[#allocation5 + $0xe04] ss:$48 sps:$4 sm:$0xff]  }
 0x3d8   :  { %4152 = vmatprep.subr.bf16.mxu0 %v5622_v42  ;;  %4193 = vmatprep.subr.bf16.mxu1 %v5625_v54  ;;  %v5691_v42 = vld [vmem:[#allocation5 + $0xe0c] ss:$48 sps:$4 sm:$0xff]   ;;  %v5686_v54 = vld [vmem:[#allocation5 + $0xe00] ss:$48 sps:$4 sm:$0xff]  }
 0x3df   :  { %4153 = vmatpush1.bf16.xpose.msra.mxu0 %v5620_v43  ;;  %4194 = vmatpush1.bf16.xpose.msra.mxu1 %v5623_v44  ;;  %v5694_v43 = vld [vmem:[#allocation5 + $0xda4] ss:$48 sps:$4 sm:$0xff]   ;;  %v5692_v44 = vld [vmem:[#allocation5 + $0xda0] ss:$48 sps:$4 sm:$0xff]  }
 0x3e0   :  { %4154 = vmatprep.subr.bf16.mxu0 %v5628_v2  ;;  %4195 = vmatprep.subr.bf16.mxu1 %v5631_v45  ;;  %v5700_v2 = vld [vmem:[#allocation5 + $0xd44] ss:$48 sps:$4 sm:$0xff]   ;;  %v5698_v45 = vld [vmem:[#allocation5 + $0xd40] ss:$48 sps:$4 sm:$0xff]  }
 0x3e6   :  { %v4008_v48 = vpop.f32.mrf.mxu0  ;;  %v4049_v49 = vpop.f32.mrf.mxu1 }
 0x3e7   :  { %v4009_v50 = vadd.f32 %v4008_v48, %v5971_v36  ;;  %4155 = vmatpush2.bf16.xpose.msra.mxu0 %v5626_v58  ;;  %4196 = vmatpush2.bf16.xpose.msra.mxu1 %v5629_v46  ;;  %v5638_v36 = vld [vmem:[#allocation5 + $0x10f0] ss:$48 sps:$4 sm:$0xff]   ;;  %v5701_v58 = vld [vmem:[#allocation5 + $0xd48] ss:$48 sps:$4 sm:$0xff]   ;;  %v5706_v46 = vld [vmem:[#allocation5 + $0xce4] ss:$48 sps:$4 sm:$0xff]  }
 0x3e8   :  { %v4010_v51 = vpop.f32.mrf.mxu0  ;;  %v4051_v52 = vpop.f32.mrf.mxu1  ;;  %4156 = vmatprep.subr.bf16.mxu0 %v5634_v47  ;;  %4197 = vmatprep.subr.bf16.mxu1 %v5637_v5  ;;  %v5709_v47 = vld [vmem:[#allocation5 + $0xcec] ss:$48 sps:$4 sm:$0xff]   ;;  %v5704_v5 = vld [vmem:[#allocation5 + $0xce0] ss:$48 sps:$4 sm:$0xff]   ;;  %v5707_v48 = vld [vmem:[#allocation5 + $0xce8] ss:$48 sps:$4 sm:$0xff]  }
 0x3e9   :  { %v4050_v53 = vadd.f32 %v4049_v49, %v4009_v50  ;;  %v4011_v55 = vadd.f32 %v4010_v51, %v5974_v40  ;;  %v5644_v40 = vld [vmem:[#allocation5 + $0x1090] ss:$48 sps:$4 sm:$0xff]   ;;  %v5712_v49 = vld [vmem:[#allocation5 + $0xc84] ss:$48 sps:$4 sm:$0xff]   ;;  %v5715_v50 = vld [vmem:[#allocation5 + $0xc8c] ss:$48 sps:$4 sm:$0xff]  }
 0x3ea   :  { %v4012_v56 = vpop.f32.mrf.mxu0  ;;  %v4053_v57 = vpop.f32.mrf.mxu1  ;;  %v5710_v51 = vld [vmem:[#allocation5 + $0xc80] ss:$48 sps:$4 sm:$0xff]  }
 0x3eb   :  { %4304 = vst [vmem:[#allocation8 + $0x10] sm:$0xff] %v4050_v53  ;;  %v4052_v27 = vadd.f32 %v4051_v52, %v4011_v55  ;;  %v5713_v52 = vld [vmem:[#allocation5 + $0xc88] ss:$48 sps:$4 sm:$0xff]   ;;  %v5718_v53 = vld [vmem:[#allocation5 + $0xc24] ss:$48 sps:$4 sm:$0xff]  }
 0x3ec   :  { %v4013_v60 = vpop.f32.mrf.mxu0  ;;  %v4054_v0 = vpop.f32.mrf.mxu1  ;;  %v5721_v55 = vld [vmem:[#allocation5 + $0xc2c] ss:$48 sps:$4 sm:$0xff]   ;;  %v5716_v56 = vld [vmem:[#allocation5 + $0xc20] ss:$48 sps:$4 sm:$0xff]   ;;  %v5719_v57 = vld [vmem:[#allocation5 + $0xc28] ss:$48 sps:$4 sm:$0xff]  }
 0x3ed   :  { %4305 = vst [vmem:[#allocation8 + $0x18] sm:$0xff] %v4052_v27  ;;  %v5724_v27 = vld [vmem:[#allocation5 + $0x11c4] ss:$48 sps:$4 sm:$0xff]   ;;  %v676_v60 = vsub.s32 5, %v5922_v61 }
 0x3ee   :  { %v5770_v0 = vld [vmem:[#allocation7] sm:$0x3f] }
 0x3ef   :  { %4157 = vmatpush2.bf16.xpose.msra.mxu0 %v5632_v59  ;;  %4198 = vmatpush2.bf16.xpose.msra.mxu1 %v5635_v29  ;;  %v5727_v59 = vld [vmem:[#allocation5 + $0x11cc] ss:$48 sps:$4 sm:$0xff]   ;;  %v672_v29 = vsub.s32 4, %v5922_v61 }
 0x3f0   :  { %4158 = vmatprep.subr.bf16.mxu0 %v5640_v3  ;;  %4199 = vmatprep.subr.bf16.mxu1 %v5643_v18  ;;  %v5722_v18 = vld [vmem:[#allocation5 + $0x11c0] ss:$48 sps:$4 sm:$0xff]  }
 0x3f1   :  { %v673_v3 = vrot.slane %v5770_v0, %v672_v29 }
 0x3f7   :  { %4159 = vmatpush2.bf16.xpose.msra.mxu0 %v5638_v36  ;;  %4200 = vmatpush2.bf16.xpose.msra.mxu1 %v5641_v4  ;;  %v5725_v36 = vld [vmem:[#allocation5 + $0x11c8] ss:$48 sps:$4 sm:$0xff]   ;;  %v5730_v4 = vld [vmem:[#allocation5 + $0x1164] ss:$48 sps:$4 sm:$0xff]  }
 0x3f8   :  { %4160 = vmatprep.subr.bf16.mxu0 %v5646_v6  ;;  %4201 = vmatprep.subr.bf16.mxu1 %v5649_v7  ;;  %v5733_v6 = vld [vmem:[#allocation5 + $0x116c] ss:$48 sps:$4 sm:$0xff]   ;;  %v677_v7 = vrot.slane %v5770_v0, %v676_v60 }
 0x3ff   :  { %4161 = vmatpush2.bf16.xpose.msra.mxu0 %v5644_v40  ;;  %4202 = vmatpush2.bf16.xpose.msra.mxu1 %v5647_v22 }
 0x400   :  { %4162 = vmatprep.subr.bf16.mxu0 %v5652_v1  ;;  %4203 = vmatprep.subr.bf16.mxu1 %v5655_v8 }
 0x407   :  { %4163 = vmatpush2.bf16.xpose.msra.mxu0 %v5650_v9  ;;  %4204 = vmatpush2.bf16.xpose.msra.mxu1 %v5653_v10 }
 0x408   :  { %4164 = vmatprep.subr.bf16.mxu0 %v5658_v13  ;;  %4205 = vmatprep.subr.bf16.mxu1 %v5661_v14 }
 0x40f   :  { %4165 = vmatpush2.bf16.xpose.msra.mxu0 %v5656_v15  ;;  %4206 = vmatpush2.bf16.xpose.msra.mxu1 %v5659_v19  ;;  %v5728_v19 = vld [vmem:[#allocation5 + $0x1160] ss:$48 sps:$4 sm:$0xff]  }
 0x410   :  { %4166 = vmatprep.subr.bf16.mxu0 %v5664_v11  ;;  %4207 = vmatprep.subr.bf16.mxu1 %v5667_v20  ;;  %v5731_v11 = vld [vmem:[#allocation5 + $0x1168] ss:$48 sps:$4 sm:$0xff]  }
 0x417   :  { %4167 = vmatpush2.bf16.xpose.msra.mxu0 %v5662_v12  ;;  %4208 = vmatpush2.bf16.xpose.msra.mxu1 %v5665_v21  ;;  %v5736_v21 = vld [vmem:[#allocation5 + $0x1104] ss:$48 sps:$4 sm:$0xff]  }
 0x418   :  { %4168 = vmatprep.subr.bf16.mxu0 %v5670_v16  ;;  %4209 = vmatprep.subr.bf16.mxu1 %v5673_v23  ;;  %v5739_v16 = vld [vmem:[#allocation5 + $0x110c] ss:$48 sps:$4 sm:$0xff]   ;;  %v5734_v23 = vld [vmem:[#allocation5 + $0x1100] ss:$48 sps:$4 sm:$0xff]  }
 0x41f   :  { %4169 = vmatpush2.bf16.xpose.msra.mxu0 %v5668_v17  ;;  %4210 = vmatpush2.bf16.xpose.msra.mxu1 %v5671_v24  ;;  %v5737_v17 = vld [vmem:[#allocation5 + $0x1108] ss:$48 sps:$4 sm:$0xff]   ;;  %v5742_v24 = vld [vmem:[#allocation5 + $0x10a4] ss:$48 sps:$4 sm:$0xff]  }
 0x420   :  { %4220 = vmatprep.subr.bf16.mxu0 %v5676_v28  ;;  %4261 = vmatprep.subr.bf16.mxu1 %v5679_v30  ;;  %v5745_v28 = vld [vmem:[#allocation5 + $0x10ac] ss:$48 sps:$4 sm:$0xff]   ;;  %v5740_v30 = vld [vmem:[#allocation5 + $0x10a0] ss:$48 sps:$4 sm:$0xff]  }
 0x426   :  { %4171 = vmatmul.mubr.bf16.vlgmr.msra.gmra.mxu0 %v5910_v25  ;;  %4212 = vmatmul.mubr.bf16.vlgmr.msra.gmra.mxu1 %v5912_v26  ;;  %v5689_v25 = vld [vmem:[#allocation5 + $0xe08] ss:$48 sps:$4 sm:$0xff]   ;;  %v5697_v26 = vld [vmem:[#allocation5 + $0xdac] ss:$48 sps:$4 sm:$0xff]  }
 0x427   :  { %4221 = vmatpush1.bf16.xpose.msra.mxu0 %v5674_v31  ;;  %4262 = vmatpush1.bf16.xpose.msra.mxu1 %v5677_v34  ;;  %v5743_v31 = vld [vmem:[#allocation5 + $0x10a8] ss:$48 sps:$4 sm:$0xff]   ;;  %v5748_v34 = vld [vmem:[#allocation5 + $0x1044] ss:$48 sps:$4 sm:$0xff]  }
 0x428   :  { %4222 = vmatprep.subr.bf16.mxu0 %v5682_v35  ;;  %4263 = vmatprep.subr.bf16.mxu1 %v5685_v37  ;;  %v5751_v35 = vld [vmem:[#allocation5 + $0x104c] ss:$48 sps:$4 sm:$0xff]   ;;  %v5746_v37 = vld [vmem:[#allocation5 + $0x1040] ss:$48 sps:$4 sm:$0xff]  }
 0x429   :  { %4252 = vmatprep.mubr.bf16.mxu0 %v5914_v32  ;;  %4293 = vmatprep.mubr.bf16.mxu1 %v5916_v33  ;;  %v5695_v32 = vld [vmem:[#allocation5 + $0xda8] ss:$48 sps:$4 sm:$0xff]   ;;  %v5703_v33 = vld [vmem:[#allocation5 + $0xd4c] ss:$48 sps:$4 sm:$0xff]  }
 0x42f   :  { %4223 = vmatpush1.bf16.xpose.msra.mxu0 %v5680_v38  ;;  %4264 = vmatpush1.bf16.xpose.msra.mxu1 %v5683_v39  ;;  %v5749_v38 = vld [vmem:[#allocation5 + $0x1048] ss:$48 sps:$4 sm:$0xff]   ;;  %v5754_v39 = vld [vmem:[#allocation5 + $0xfe4] ss:$48 sps:$4 sm:$0xff]  }
 0x430   :  { %4224 = vmatprep.subr.bf16.mxu0 %v5688_v41  ;;  %4265 = vmatprep.subr.bf16.mxu1 %v5691_v42  ;;  %v5757_v41 = vld [vmem:[#allocation5 + $0xfec] ss:$48 sps:$4 sm:$0xff]   ;;  %v5752_v42 = vld [vmem:[#allocation5 + $0xfe0] ss:$48 sps:$4 sm:$0xff]  }
 0x437   :  { %4225 = vmatpush1.bf16.xpose.msra.mxu0 %v5686_v54  ;;  %4266 = vmatpush1.bf16.xpose.msra.mxu1 %v5689_v25  ;;  %v5755_v54 = vld [vmem:[#allocation5 + $0xfe8] ss:$48 sps:$4 sm:$0xff]   ;;  %v5760_v25 = vld [vmem:[#allocation5 + $0xf84] ss:$48 sps:$4 sm:$0xff]  }
 0x438   :  { %4226 = vmatprep.subr.bf16.mxu0 %v5694_v43  ;;  %4267 = vmatprep.subr.bf16.mxu1 %v5697_v26  ;;  %v5763_v43 = vld [vmem:[#allocation5 + $0xf8c] ss:$48 sps:$4 sm:$0xff]   ;;  %v5758_v26 = vld [vmem:[#allocation5 + $0xf80] ss:$48 sps:$4 sm:$0xff]  }
 0x43f   :  { %4227 = vmatpush1.bf16.xpose.msra.mxu0 %v5692_v44  ;;  %4268 = vmatpush1.bf16.xpose.msra.mxu1 %v5695_v32  ;;  %v5761_v44 = vld [vmem:[#allocation5 + $0xf88] ss:$48 sps:$4 sm:$0xff]   ;;  %v5766_v32 = vld [vmem:[#allocation5 + $0xf24] ss:$48 sps:$4 sm:$0xff]  }
 0x440   :  { %4228 = vmatprep.subr.bf16.mxu0 %v5700_v2  ;;  %4269 = vmatprep.subr.bf16.mxu1 %v5703_v33  ;;  %v5769_v2 = vld [vmem:[#allocation5 + $0xf2c] ss:$48 sps:$4 sm:$0xff]   ;;  %v5764_v33 = vld [vmem:[#allocation5 + $0xf20] ss:$48 sps:$4 sm:$0xff]  }
 0x447   :  { %4229 = vmatpush1.bf16.xpose.msra.mxu0 %v5698_v45  ;;  %4270 = vmatpush1.bf16.xpose.msra.mxu1 %v5701_v58  ;;  %v5767_v45 = vld [vmem:[#allocation5 + $0xf28] ss:$48 sps:$4 sm:$0xff]  }
 0x448   :  { %4230 = vmatprep.subr.bf16.mxu0 %v5706_v46  ;;  %4271 = vmatprep.subr.bf16.mxu1 %v5709_v47 }
 0x44f   :  { %4231 = vmatpush1.bf16.xpose.msra.mxu0 %v5704_v5  ;;  %4272 = vmatpush1.bf16.xpose.msra.mxu1 %v5707_v48 }
 0x450   :  { %4232 = vmatprep.subr.bf16.mxu0 %v5712_v49  ;;  %4273 = vmatprep.subr.bf16.mxu1 %v5715_v50 }
 0x457   :  { %4233 = vmatpush1.bf16.xpose.msra.mxu0 %v5710_v51  ;;  %4274 = vmatpush1.bf16.xpose.msra.mxu1 %v5713_v52 }
 0x458   :  { %4234 = vmatprep.subr.bf16.mxu0 %v5718_v53  ;;  %4275 = vmatprep.subr.bf16.mxu1 %v5721_v55 }
 0x45f   :  { %4235 = vmatpush1.bf16.xpose.msra.mxu0 %v5716_v56  ;;  %4276 = vmatpush1.bf16.xpose.msra.mxu1 %v5719_v57 }
 0x460   :  { %4236 = vmatprep.subr.bf16.mxu0 %v5724_v27  ;;  %4277 = vmatprep.subr.bf16.mxu1 %v5727_v59 }
 0x466   :  { %v4090_v40 = vpop.f32.mrf.mxu0  ;;  %v4131_v22 = vpop.f32.mrf.mxu1 }
 0x467   :  { %v4091_v1 = vadd.f32 %v4090_v40, %v673_v3  ;;  %4237 = vmatpush2.bf16.xpose.msra.mxu0 %v5722_v18  ;;  %4278 = vmatpush2.bf16.xpose.msra.mxu1 %v5725_v36 }
 0x468   :  { %v4092_v8 = vpop.f32.mrf.mxu0  ;;  %v4133_v9 = vpop.f32.mrf.mxu1  ;;  %4238 = vmatprep.subr.bf16.mxu0 %v5730_v4  ;;  %4279 = vmatprep.subr.bf16.mxu1 %v5733_v6 }
 0x469   :  { %v5988_v10 = vadd.f32 %v4131_v22, %v4091_v1  ;;  %v4093_v13 = vadd.f32 %v4092_v8, %v677_v7 }
 0x46a   :  { %v4094_v61 = vpop.f32.mrf.mxu0  ;;  %v4135_v14 = vpop.f32.mrf.mxu1 }
 0x46b   :  { %v5990_v15 = vadd.f32 %v4133_v9, %v4093_v13 }
 0x46c   :  { %v4095_v20 = vpop.f32.mrf.mxu0  ;;  %v4136_v12 = vpop.f32.mrf.mxu1 }
 0x46f   :  { %4239 = vmatpush2.bf16.xpose.msra.mxu0 %v5728_v19  ;;  %4280 = vmatpush2.bf16.xpose.msra.mxu1 %v5731_v11 }
 0x470   :  { %4240 = vmatprep.subr.bf16.mxu0 %v5736_v21  ;;  %4281 = vmatprep.subr.bf16.mxu1 %v5739_v16 }
 0x477   :  { %4241 = vmatpush2.bf16.xpose.msra.mxu0 %v5734_v23  ;;  %4282 = vmatpush2.bf16.xpose.msra.mxu1 %v5737_v17 }
 0x478   :  { %4242 = vmatprep.subr.bf16.mxu0 %v5742_v24  ;;  %4283 = vmatprep.subr.bf16.mxu1 %v5745_v28 }
 0x47f   :  { %4243 = vmatpush2.bf16.xpose.msra.mxu0 %v5740_v30  ;;  %4284 = vmatpush2.bf16.xpose.msra.mxu1 %v5743_v31 }
 0x480   :  { %4244 = vmatprep.subr.bf16.mxu0 %v5748_v34  ;;  %4285 = vmatprep.subr.bf16.mxu1 %v5751_v35 }
 0x487   :  { %4245 = vmatpush2.bf16.xpose.msra.mxu0 %v5746_v37  ;;  %4286 = vmatpush2.bf16.xpose.msra.mxu1 %v5749_v38 }
 0x488   :  { %4246 = vmatprep.subr.bf16.mxu0 %v5754_v39  ;;  %4287 = vmatprep.subr.bf16.mxu1 %v5757_v41 }
 0x48f   :  { %4247 = vmatpush2.bf16.xpose.msra.mxu0 %v5752_v42  ;;  %4288 = vmatpush2.bf16.xpose.msra.mxu1 %v5755_v54 }
 0x490   :  { %4248 = vmatprep.subr.bf16.mxu0 %v5760_v25  ;;  %4289 = vmatprep.subr.bf16.mxu1 %v5763_v43 }
 0x497   :  { %4249 = vmatpush2.bf16.xpose.msra.mxu0 %v5758_v26  ;;  %4290 = vmatpush2.bf16.xpose.msra.mxu1 %v5761_v44 }
 0x498   :  { %4250 = vmatprep.subr.bf16.mxu0 %v5766_v32  ;;  %4291 = vmatprep.subr.bf16.mxu1 %v5769_v2 }
 0x49f   :  { %4251 = vmatpush2.bf16.xpose.msra.mxu0 %v5764_v33  ;;  %4292 = vmatpush2.bf16.xpose.msra.mxu1 %v5767_v45 }
 0x4a6   :  { %4253 = vmatmul.mubr.bf16.vlgmr.msra.gmra.mxu0 %v5934_v62  ;;  %4294 = vmatmul.mubr.bf16.vlgmr.msra.gmra.mxu1 %v5936_v63 }
 0x4e6   :  { %v4172_v58 = vpop.f32.mrf.mxu0  ;;  %v4213_v46 = vpop.f32.mrf.mxu1 }
 0x4e7   :  { %v4173_v47 = vadd.f32 %v4172_v58, %v5988_v10 }
 0x4e8   :  { %v4174_v5 = vpop.f32.mrf.mxu0  ;;  %v4215_v48 = vpop.f32.mrf.mxu1 }
 0x4e9   :  { %v4214_v49 = vadd.f32 %v4213_v46, %v4173_v47  ;;  %v4175_v50 = vadd.f32 %v4174_v5, %v5990_v15 }
 0x4ea   :  { %v4176_v51 = vpop.f32.mrf.mxu0  ;;  %v4217_v52 = vpop.f32.mrf.mxu1 }
 0x4eb   :  { %v4216_v53 = vadd.f32 %v4215_v48, %v4175_v50 }
 0x4ec   :  { %v4177_v55 = vpop.f32.mrf.mxu0  ;;  %v4218_v56 = vpop.f32.mrf.mxu1 }
 0x566   :  { %v4254_v57 = vpop.f32.mrf.mxu0  ;;  %v4295_v27 = vpop.f32.mrf.mxu1 }
 0x567   :  { %v4255_v59 = vadd.f32 %v4254_v57, %v4214_v49 }
 0x568   :  { %v4256_v62 = vpop.f32.mrf.mxu0  ;;  %v4297_v29 = vpop.f32.mrf.mxu1 }
 0x569   :  { %v4296_v63 = vadd.f32 %v4295_v27, %v4255_v59  ;;  %v4257_v60 = vadd.f32 %v4256_v62, %v4216_v53 }
 0x56a   :  { %v4258_v0 = vpop.f32.mrf.mxu0  ;;  %v4299_v3 = vpop.f32.mrf.mxu1 }
 0x56b   :  { %4306 = vst [vmem:[#allocation8 + $0x20] sm:$0xff] %v4296_v63  ;;  %v4298_v18 = vadd.f32 %v4297_v29, %v4257_v60 }
 0x56c   :  { %v4259_v36 = vpop.f32.mrf.mxu0  ;;  %v4300_v4 = vpop.f32.mrf.mxu1 }
 0x56d   :  { %4307 = vst [vmem:[#allocation8 + $0x28] sm:$0xff] %v4298_v18 }
 0x56e   :  { %5842 = shalt.err (!%p5839_p5)
}
 0x56f   :  { %4317 = dma.vmem_to_hbm [thread:$0]  %s4315_s2, 768, %s6002_s3, [#allocation4]  }
 0x570   :  { %5855 = dma.done.wait [#allocation4], 768  }
 0x571   :  { %5856 = vsyncadd [#allocation4], 4294966528 }
 0x572   :  { %4321 = vsyncpa [#allocation3], 1 }
 0x573   :  { %4322 = vsyncpa [#allocation6], 1 }
 0x574   :  { %4323 = vsyncpa [#allocation4], 1 }

</bundles_post_ra>
